<compile_context>
chip_gen: v6e
topology: v6e:2x2x1
jax: 0.10.0
libtpu: 0.0.40
codegen_flags: <defaults>
</compile_context>

<pallas_src>
import jax
import jax.numpy as jnp
from jax.experimental import pallas as pl
from jax.experimental.pallas import tpu as pltpu


def cnn_block_kernel(x_ref, halo_ref, w_ref, scale_ref, shift_ref, o_ref,
                     xw_ref, acc_ref):
    """Fused conv(stride=1, bias=False) + BN scale/shift + LeakyReLU(0.1).

    x_ref:     (TH, Wp, C)          bf16  body rows of the padded input tile
    halo_ref:  (max(KH-1,1), Wp, C) bf16  next KH-1 rows (halo)
    w_ref:     (KH, KW, C, TN)      bf16  conv weights (one O-channel tile)
    scale_ref: (1, TN)              f32   gamma / sqrt(var + eps)
    shift_ref: (1, TN)              f32   beta - mean * scale
    o_ref:     (TH, Wo, TN)         out_dtype
    xw_ref:    (TH+KH-1, Wp, C)     bf16  VMEM scratch: body + halo staged once
    acc_ref:   (TH*Wo, TN)          f32   VMEM accumulator
    """
    TH, Wo, TN = o_ref.shape
    KH, KW, C, _ = w_ref.shape

    # Stage body + halo rows contiguously in a VMEM scratch; per-tap slices
    # then read from the ref (cheap vld) rather than holding a big live value.
    xw_ref[0:TH] = x_ref[...]
    if KH > 1:
        xw_ref[TH:TH + KH - 1] = halo_ref[0:KH - 1]

    # Per-tap MXU accumulation (K = C): avoids materializing the KH*KW-times
    # larger im2col "patches" value of the previous version.
    first = True
    for kh in range(KH):
        for kw in range(KW):
            xs = xw_ref[kh:kh + TH, kw:kw + Wo, :].reshape(TH * Wo, C)
            part = jnp.dot(xs, w_ref[kh, kw],
                           preferred_element_type=jnp.float32)
            if first:
                acc_ref[...] = part
                first = False
            else:
                acc_ref[...] += part

    # Epilogue in f32: BN scale/shift (scale NOT pre-folded into bf16 weights)
    # + LeakyReLU(0.1), then cast to the (bf16 by default) output dtype.
    y = acc_ref[...] * scale_ref[...] + shift_ref[...]
    y = jnp.where(y > 0.0, y, 0.1 * y)
    o_ref[...] = y.reshape(TH, Wo, TN).astype(o_ref.dtype)


def _vmem_limit_bytes():
    # Generation-aware scoped-VMEM limit: ~48 MiB on v7x (64 MiB physical),
    # ~96 MiB on v5e/v6e (128 MiB physical).
    try:
        cap = int(pltpu.get_tpu_info().vmem_capacity_bytes)
    except Exception:
        cap = 64 * 1024 * 1024
    return int(min(cap * 3 // 4, 100 * 1024 * 1024))


def _pick_channel_tile(Op, cap):
    cap = max(128, min(cap, Op))
    for tn in range(cap - cap % 128, 0, -128):
        if Op % tn == 0:
            return tn
    return Op


def _pick_row_tile(Ho, Wo, Wp, C, KH, KW, TN, out_bytes, budget):
    # Aim for an MXU M dimension (TH*Wo) around 8192, then shrink until the
    # per-step working set (double-buffered tiles + scratch + resident weight
    # tile) fits the generation-specific VMEM budget.
    th = max(1, min(Ho, max(1, 8192 // max(Wo, 1))))

    def vmem_use(t):
        body = t * Wp * C * 2
        halo = max(KH - 1, 1) * Wp * C * 2
        out_t = t * Wo * TN * out_bytes
        acc = t * Wo * TN * 4
        xw = (t + KH - 1) * Wp * C * 2
        wts = KH * KW * C * TN * 2
        return 2 * (body + halo + out_t) + acc + xw + wts

    while th > 1 and vmem_use(th) > budget:
        th -= max(1, th // 4)
    return max(th, 1)


def cnn_block(x, w, gamma, beta, running_mean, running_var, *,
              stride=1, padding=1, eps=1e-5,
              row_tile=None, channel_tile=512, out_dtype=jnp.bfloat16):
    """x: (N, C, H, W) f32; w: (O, C, KH, KW) f32 -> (N, O, Ho, Wo) out_dtype."""
    assert stride == 1, "TODO(synk): stride != 1 not implemented"
    N, C, H, W = x.shape
    O, _, KH, KW = w.shape
    Hp = H + 2 * padding
    Wp = W + 2 * padding
    Ho = Hp - KH + 1
    Wo = Wp - KW + 1

    Op = ((O + 127) // 128) * 128            # lane-dense output channels
    TN = _pick_channel_tile(Op, channel_tile)
    n_ct = Op // TN

    out_bytes = jnp.dtype(out_dtype).itemsize
    vmem_limit = _vmem_limit_bytes()
    if row_tile is None:
        TH = _pick_row_tile(Ho, Wo, Wp, C, KH, KW, TN, out_bytes,
                            int(vmem_limit * 0.85))
    else:
        TH = max(1, min(row_tile, Ho))
    n_rt = pl.cdiv(Ho, TH)
    Ho_pad = n_rt * TH                        # grid covers Ho_pad rows

    # ---- wrapper glue (trace-time) ----
    # NCHW -> NHWC, cast to bf16 (halves HBM traffic), zero-pad spatially; the
    # extra bottom rows make every row window in-bounds for the cdiv grid.
    x_nhwc = jnp.transpose(x, (0, 2, 3, 1)).astype(jnp.bfloat16)
    xp = jnp.pad(x_nhwc, ((0, 0),
                          (padding, padding + (Ho_pad - Ho)),
                          (padding, padding),
                          (0, 0)))
    # xp: (N, Ho_pad + KH - 1, Wp, C)

    # Tiny per-tile halo (KH-1 rows) instead of duplicating the whole input.
    halo_rows = max(KH - 1, 1)
    if KH > 1:
        halo = jnp.stack(
            [xp[:, r * TH + TH: r * TH + TH + KH - 1] for r in range(n_rt)],
            axis=1)
    else:
        halo = jnp.zeros((N, n_rt, halo_rows, Wp, C), jnp.bfloat16)
    # halo: (N, n_rt, halo_rows, Wp, C)

    # Weights in (KH, KW, C, O) bf16, padded to Op channels.  BN scale/shift
    # stay f32 and are applied in the kernel epilogue (accuracy).
    w_hwio = jnp.transpose(w, (2, 3, 1, 0))
    w_pad = jnp.pad(w_hwio, ((0, 0), (0, 0), (0, 0), (0, Op - O))
                    ).astype(jnp.bfloat16)
    inv_std = jax.lax.rsqrt(running_var.astype(jnp.float32) + eps)
    scale = gamma.astype(jnp.float32) * inv_std
    shift = beta.astype(jnp.float32) - running_mean.astype(jnp.float32) * scale
    scale_p = jnp.pad(scale, (0, Op - O)).reshape(1, Op)
    shift_p = jnp.pad(shift, (0, Op - O)).reshape(1, Op)

    flops = 2 * N * Ho * Wo * KH * KW * C * O
    bytes_accessed = (xp.size * 2 + halo.size * 2 + w_pad.size * 2
                      + N * Ho_pad * Wo * Op * out_bytes)

    out_pad = pl.pallas_call(
        cnn_block_kernel,
        out_shape=jax.ShapeDtypeStruct((N, Ho_pad, Wo, Op), out_dtype),
        grid=(N, n_rt, n_ct),
        in_specs=[
            # body rows of this (image, row-tile); oc-invariant -> not re-DMA'd
            pl.BlockSpec((None, TH, Wp, C), lambda n, r, oc: (n, r, 0, 0)),
            # halo rows for this (image, row-tile)
            pl.BlockSpec((None, None, halo_rows, Wp, C),
                         lambda n, r, oc: (n, r, 0, 0, 0)),
            # weights / BN params: one output-channel tile
            pl.BlockSpec((KH, KW, C, TN), lambda n, r, oc: (0, 0, 0, oc)),
            pl.BlockSpec((1, TN), lambda n, r, oc: (0, oc)),
            pl.BlockSpec((1, TN), lambda n, r, oc: (0, oc)),
        ],
        out_specs=pl.BlockSpec((None, TH, Wo, TN),
                               lambda n, r, oc: (n, r, 0, oc)),
        scratch_shapes=[
            pltpu.VMEM((TH + KH - 1, Wp, C), jnp.bfloat16),   # staged window
            pltpu.VMEM((TH * Wo, TN), jnp.float32),           # f32 accumulator
        ],
        compiler_params=pltpu.CompilerParams(
            dimension_semantics=("parallel", "parallel", "parallel"),
            vmem_limit_bytes=vmem_limit),
        cost_estimate=pl.CostEstimate(flops=int(flops), transcendentals=0,
                                      bytes_accessed=int(bytes_accessed)),
    )(xp, halo, w_pad, scale_p, shift_p)

    # Drop row/channel padding, back to NCHW (keep NHWC/padded-Op when chaining).
    out = out_pad[:, :Ho, :, :O]
    return jnp.transpose(out, (0, 3, 1, 2))


def _reference(x, w, gamma, beta, mean, var, padding, eps):
    y = jax.lax.conv_general_dilated(
        x, w, window_strides=(1, 1), padding=[(padding, padding)] * 2,
        dimension_numbers=("NCHW", "OIHW", "NCHW"))
    inv = jax.lax.rsqrt(var + eps)
    y = (y - mean[None, :, None, None]) * (gamma * inv)[None, :, None, None] \
        + beta[None, :, None, None]
    return jnp.where(y > 0, y, 0.1 * y)


if __name__ == "__main__":
    key = jax.random.PRNGKey(0)
    k_x, k_w, k_g, k_b, k_m, k_v = jax.random.split(key, 6)

    # Small shapes consistent with CNNBlock(in_channels=4, out_channels=8,
    # kernel_size=3, stride=1, padding=1).
    N, C, H, W = 2, 4, 16, 16
    O, KH, KW = 8, 3, 3

    x = jax.random.normal(k_x, (N, C, H, W), jnp.float32)
    w = jax.random.normal(k_w, (O, C, KH, KW), jnp.float32) * 0.1
    gamma = 1.0 + 0.1 * jax.random.normal(k_g, (O,), jnp.float32)
    beta = 0.1 * jax.random.normal(k_b, (O,), jnp.float32)
    running_mean = 0.1 * jax.random.normal(k_m, (O,), jnp.float32)
    running_var = 1.0 + 0.1 * jax.random.uniform(k_v, (O,), jnp.float32)

    # row_tile=8 -> grid=(2, 2, 1): exercises batch tiling, row tiling with the
    # halo side-input, and the (trivial here) output-channel axis.
    out = cnn_block(x, w, gamma, beta, running_mean, running_var,
                    padding=1, eps=1e-5, row_tile=8, out_dtype=jnp.bfloat16)
    out = jax.block_until_ready(out)
    assert out.shape == (N, O, H, W), out.shape

    # Loose tolerance: bf16 matmul operands / bf16 output with f32 accumulation
    # and f32 BN epilogue.
    ref = _reference(x, w, gamma, beta, running_mean, running_var, 1, 1e-5)
    err = float(jnp.max(jnp.abs(out.astype(jnp.float32) - ref)))
    assert err < 5e-2, f"max abs err {err}"

    print("KERNEL_OK")
</pallas_src>

<mosaic_0001>
module attributes {stable_mosaic.version = 11 : i64} {
  func.func @cnn_block_kernel(%arg0: i32, %arg1: i32, %arg2: i32, %arg3: memref<1x8x18x4xbf16, #tpu.memory_space<vmem>>, %arg4: memref<1x1x2x18x4xbf16, #tpu.memory_space<vmem>>, %arg5: memref<3x3x4x128xbf16, #tpu.memory_space<vmem>>, %arg6: memref<1x128xf32, #tpu.memory_space<vmem>>, %arg7: memref<1x128xf32, #tpu.memory_space<vmem>>, %arg8: memref<1x8x16x128xbf16, #tpu.memory_space<vmem>>, %arg9: memref<10x18x4xbf16, #tpu.memory_space<vmem>>, %arg10: memref<128x128xf32, #tpu.memory_space<vmem>>) attributes {dimension_semantics = [#tpu.dimension_semantics<parallel>, #tpu.dimension_semantics<parallel>, #tpu.dimension_semantics<parallel>], iteration_bounds = array<i64: 2, 2, 1>, scalar_prefetch = 0 : i64, scratch_operands = 2 : i64, tpu.core_type = #tpu.core_type<tc>, window_params = [{transform_indices = @transform_0, window_bounds = array<i64: 1, 8, 18, 4>}, {transform_indices = @transform_1, window_bounds = array<i64: 1, 1, 2, 18, 4>}, {transform_indices = @transform_2, window_bounds = array<i64: 3, 3, 4, 128>}, {transform_indices = @transform_3, window_bounds = array<i64: 1, 128>}, {transform_indices = @transform_4, window_bounds = array<i64: 1, 128>}, {transform_indices = @transform_5, window_bounds = array<i64: 1, 8, 16, 128>}]} {
    %c0 = arith.constant 0 : index
    %c0_0 = arith.constant 0 : index
    %c0_1 = arith.constant 0 : index
    %c0_2 = arith.constant 0 : index
    %0 = vector.load %arg3[%c0, %c0_0, %c0_1, %c0_2] : memref<1x8x18x4xbf16, #tpu.memory_space<vmem>>, vector<1x8x18x4xbf16>
    %1 = vector.shape_cast %0 : vector<1x8x18x4xbf16> to vector<8x18x4xbf16>
    %c0_3 = arith.constant 0 : index
    %c0_4 = arith.constant 0 : index
    %c0_5 = arith.constant 0 : index
    %2 = vector.load %arg9[%c0_3, %c0_4, %c0_5] : memref<10x18x4xbf16, #tpu.memory_space<vmem>>, vector<8x18x4xbf16>
    tpu.vector_store %arg9[%c0_3, %c0_4, %c0_5], %1 {strides = array<i32>} : memref<10x18x4xbf16, #tpu.memory_space<vmem>>, vector<8x18x4xbf16>,
    %c0_6 = arith.constant 0 : index
    %c0_7 = arith.constant 0 : index
    %c0_8 = arith.constant 0 : index
    %c0_9 = arith.constant 0 : index
    %c0_10 = arith.constant 0 : index
    %3 = vector.load %arg4[%c0_6, %c0_7, %c0_8, %c0_9, %c0_10] : memref<1x1x2x18x4xbf16, #tpu.memory_space<vmem>>, vector<1x1x2x18x4xbf16>
    %4 = vector.shape_cast %3 : vector<1x1x2x18x4xbf16> to vector<2x18x4xbf16>
    %c8 = arith.constant 8 : index
    %c0_11 = arith.constant 0 : index
    %c0_12 = arith.constant 0 : index
    %5 = vector.load %arg9[%c8, %c0_11, %c0_12] : memref<10x18x4xbf16, #tpu.memory_space<vmem>>, vector<2x18x4xbf16>
    tpu.vector_store %arg9[%c8, %c0_11, %c0_12], %4 {strides = array<i32>} : memref<10x18x4xbf16, #tpu.memory_space<vmem>>, vector<2x18x4xbf16>,
    %c0_13 = arith.constant 0 : index
    %c0_14 = arith.constant 0 : index
    %c0_15 = arith.constant 0 : index
    %6 = vector.load %arg9[%c0_13, %c0_14, %c0_15] : memref<10x18x4xbf16, #tpu.memory_space<vmem>>, vector<8x16x4xbf16>
    %7 = vector.shape_cast %6 : vector<8x16x4xbf16> to vector<128x4xbf16>
    %c0_16 = arith.constant 0 : index
    %c0_17 = arith.constant 0 : index
    %c0_18 = arith.constant 0 : index
    %c0_19 = arith.constant 0 : index
    %8 = vector.load %arg5[%c0_16, %c0_17, %c0_18, %c0_19] : memref<3x3x4x128xbf16, #tpu.memory_space<vmem>>, vector<1x1x4x128xbf16>
    %9 = vector.shape_cast %8 : vector<1x1x4x128xbf16> to vector<4x128xbf16>
    %cst = arith.constant dense<0.000000e+00> : vector<128x128xf32>
    %10 = tpu.matmul %7, %9, %cst {dimension_numbers = #tpu.dot_dimension_numbers<[1], [0], [0], [1], [0, 0, 1, 1], [], []>} : vector<128x4xbf16>, vector<4x128xbf16>, vector<128x128xf32> -> vector<128x128xf32>
    %c0_20 = arith.constant 0 : index
    %c0_21 = arith.constant 0 : index
    %11 = vector.load %arg10[%c0_20, %c0_21] : memref<128x128xf32, #tpu.memory_space<vmem>>, vector<128x128xf32>
    tpu.vector_store %arg10[%c0_20, %c0_21], %10 {strides = array<i32>} : memref<128x128xf32, #tpu.memory_space<vmem>>, vector<128x128xf32>,
    %c0_22 = arith.constant 0 : index
    %c1 = arith.constant 1 : index
    %c0_23 = arith.constant 0 : index
    %12 = vector.load %arg9[%c0_22, %c1, %c0_23] : memref<10x18x4xbf16, #tpu.memory_space<vmem>>, vector<8x16x4xbf16>
    %13 = vector.shape_cast %12 : vector<8x16x4xbf16> to vector<128x4xbf16>
    %c0_24 = arith.constant 0 : index
    %c1_25 = arith.constant 1 : index
    %c0_26 = arith.constant 0 : index
    %c0_27 = arith.constant 0 : index
    %14 = vector.load %arg5[%c0_24, %c1_25, %c0_26, %c0_27] : memref<3x3x4x128xbf16, #tpu.memory_space<vmem>>, vector<1x1x4x128xbf16>
    %15 = vector.shape_cast %14 : vector<1x1x4x128xbf16> to vector<4x128xbf16>
    %cst_28 = arith.constant dense<0.000000e+00> : vector<128x128xf32>
    %16 = tpu.matmul %13, %15, %cst_28 {dimension_numbers = #tpu.dot_dimension_numbers<[1], [0], [0], [1], [0, 0, 1, 1], [], []>} : vector<128x4xbf16>, vector<4x128xbf16>, vector<128x128xf32> -> vector<128x128xf32>
    %c0_29 = arith.constant 0 : index
    %c0_30 = arith.constant 0 : index
    %17 = vector.load %arg10[%c0_29, %c0_30] : memref<128x128xf32, #tpu.memory_space<vmem>>, vector<128x128xf32>
    %18 = arith.addf %17, %16 : vector<128x128xf32>
    %c0_31 = arith.constant 0 : index
    %c0_32 = arith.constant 0 : index
    %19 = vector.load %arg10[%c0_31, %c0_32] : memref<128x128xf32, #tpu.memory_space<vmem>>, vector<128x128xf32>
    tpu.vector_store %arg10[%c0_31, %c0_32], %18 {strides = array<i32>} : memref<128x128xf32, #tpu.memory_space<vmem>>, vector<128x128xf32>,
    %c0_33 = arith.constant 0 : index
    %c2 = arith.constant 2 : index
    %c0_34 = arith.constant 0 : index
    %20 = vector.load %arg9[%c0_33, %c2, %c0_34] : memref<10x18x4xbf16, #tpu.memory_space<vmem>>, vector<8x16x4xbf16>
    %21 = vector.shape_cast %20 : vector<8x16x4xbf16> to vector<128x4xbf16>
    %c0_35 = arith.constant 0 : index
    %c2_36 = arith.constant 2 : index
    %c0_37 = arith.constant 0 : index
    %c0_38 = arith.constant 0 : index
    %22 = vector.load %arg5[%c0_35, %c2_36, %c0_37, %c0_38] : memref<3x3x4x128xbf16, #tpu.memory_space<vmem>>, vector<1x1x4x128xbf16>
    %23 = vector.shape_cast %22 : vector<1x1x4x128xbf16> to vector<4x128xbf16>
    %cst_39 = arith.constant dense<0.000000e+00> : vector<128x128xf32>
    %24 = tpu.matmul %21, %23, %cst_39 {dimension_numbers = #tpu.dot_dimension_numbers<[1], [0], [0], [1], [0, 0, 1, 1], [], []>} : vector<128x4xbf16>, vector<4x128xbf16>, vector<128x128xf32> -> vector<128x128xf32>
    %c0_40 = arith.constant 0 : index
    %c0_41 = arith.constant 0 : index
    %25 = vector.load %arg10[%c0_40, %c0_41] : memref<128x128xf32, #tpu.memory_space<vmem>>, vector<128x128xf32>
    %26 = arith.addf %25, %24 : vector<128x128xf32>
    %c0_42 = arith.constant 0 : index
    %c0_43 = arith.constant 0 : index
    %27 = vector.load %arg10[%c0_42, %c0_43] : memref<128x128xf32, #tpu.memory_space<vmem>>, vector<128x128xf32>
    tpu.vector_store %arg10[%c0_42, %c0_43], %26 {strides = array<i32>} : memref<128x128xf32, #tpu.memory_space<vmem>>, vector<128x128xf32>,
    %c1_44 = arith.constant 1 : index
    %c0_45 = arith.constant 0 : index
    %c0_46 = arith.constant 0 : index
    %28 = vector.load %arg9[%c1_44, %c0_45, %c0_46] : memref<10x18x4xbf16, #tpu.memory_space<vmem>>, vector<8x16x4xbf16>
    %29 = vector.shape_cast %28 : vector<8x16x4xbf16> to vector<128x4xbf16>
    %c1_47 = arith.constant 1 : index
    %c0_48 = arith.constant 0 : index
    %c0_49 = arith.constant 0 : index
    %c0_50 = arith.constant 0 : index
    %30 = vector.load %arg5[%c1_47, %c0_48, %c0_49, %c0_50] : memref<3x3x4x128xbf16, #tpu.memory_space<vmem>>, vector<1x1x4x128xbf16>
    %31 = vector.shape_cast %30 : vector<1x1x4x128xbf16> to vector<4x128xbf16>
    %cst_51 = arith.constant dense<0.000000e+00> : vector<128x128xf32>
    %32 = tpu.matmul %29, %31, %cst_51 {dimension_numbers = #tpu.dot_dimension_numbers<[1], [0], [0], [1], [0, 0, 1, 1], [], []>} : vector<128x4xbf16>, vector<4x128xbf16>, vector<128x128xf32> -> vector<128x128xf32>
    %c0_52 = arith.constant 0 : index
    %c0_53 = arith.constant 0 : index
    %33 = vector.load %arg10[%c0_52, %c0_53] : memref<128x128xf32, #tpu.memory_space<vmem>>, vector<128x128xf32>
    %34 = arith.addf %33, %32 : vector<128x128xf32>
    %c0_54 = arith.constant 0 : index
    %c0_55 = arith.constant 0 : index
    %35 = vector.load %arg10[%c0_54, %c0_55] : memref<128x128xf32, #tpu.memory_space<vmem>>, vector<128x128xf32>
    tpu.vector_store %arg10[%c0_54, %c0_55], %34 {strides = array<i32>} : memref<128x128xf32, #tpu.memory_space<vmem>>, vector<128x128xf32>,
    %c1_56 = arith.constant 1 : index
    %c1_57 = arith.constant 1 : index
    %c0_58 = arith.constant 0 : index
    %36 = vector.load %arg9[%c1_56, %c1_57, %c0_58] : memref<10x18x4xbf16, #tpu.memory_space<vmem>>, vector<8x16x4xbf16>
    %37 = vector.shape_cast %36 : vector<8x16x4xbf16> to vector<128x4xbf16>
    %c1_59 = arith.constant 1 : index
    %c1_60 = arith.constant 1 : index
    %c0_61 = arith.constant 0 : index
    %c0_62 = arith.constant 0 : index
    %38 = vector.load %arg5[%c1_59, %c1_60, %c0_61, %c0_62] : memref<3x3x4x128xbf16, #tpu.memory_space<vmem>>, vector<1x1x4x128xbf16>
    %39 = vector.shape_cast %38 : vector<1x1x4x128xbf16> to vector<4x128xbf16>
    %cst_63 = arith.constant dense<0.000000e+00> : vector<128x128xf32>
    %40 = tpu.matmul %37, %39, %cst_63 {dimension_numbers = #tpu.dot_dimension_numbers<[1], [0], [0], [1], [0, 0, 1, 1], [], []>} : vector<128x4xbf16>, vector<4x128xbf16>, vector<128x128xf32> -> vector<128x128xf32>
    %c0_64 = arith.constant 0 : index
    %c0_65 = arith.constant 0 : index
    %41 = vector.load %arg10[%c0_64, %c0_65] : memref<128x128xf32, #tpu.memory_space<vmem>>, vector<128x128xf32>
    %42 = arith.addf %41, %40 : vector<128x128xf32>
    %c0_66 = arith.constant 0 : index
    %c0_67 = arith.constant 0 : index
    %43 = vector.load %arg10[%c0_66, %c0_67] : memref<128x128xf32, #tpu.memory_space<vmem>>, vector<128x128xf32>
    tpu.vector_store %arg10[%c0_66, %c0_67], %42 {strides = array<i32>} : memref<128x128xf32, #tpu.memory_space<vmem>>, vector<128x128xf32>,
    %c1_68 = arith.constant 1 : index
    %c2_69 = arith.constant 2 : index
    %c0_70 = arith.constant 0 : index
    %44 = vector.load %arg9[%c1_68, %c2_69, %c0_70] : memref<10x18x4xbf16, #tpu.memory_space<vmem>>, vector<8x16x4xbf16>
    %45 = vector.shape_cast %44 : vector<8x16x4xbf16> to vector<128x4xbf16>
    %c1_71 = arith.constant 1 : index
    %c2_72 = arith.constant 2 : index
    %c0_73 = arith.constant 0 : index
    %c0_74 = arith.constant 0 : index
    %46 = vector.load %arg5[%c1_71, %c2_72, %c0_73, %c0_74] : memref<3x3x4x128xbf16, #tpu.memory_space<vmem>>, vector<1x1x4x128xbf16>
    %47 = vector.shape_cast %46 : vector<1x1x4x128xbf16> to vector<4x128xbf16>
    %cst_75 = arith.constant dense<0.000000e+00> : vector<128x128xf32>
    %48 = tpu.matmul %45, %47, %cst_75 {dimension_numbers = #tpu.dot_dimension_numbers<[1], [0], [0], [1], [0, 0, 1, 1], [], []>} : vector<128x4xbf16>, vector<4x128xbf16>, vector<128x128xf32> -> vector<128x128xf32>
    %c0_76 = arith.constant 0 : index
    %c0_77 = arith.constant 0 : index
    %49 = vector.load %arg10[%c0_76, %c0_77] : memref<128x128xf32, #tpu.memory_space<vmem>>, vector<128x128xf32>
    %50 = arith.addf %49, %48 : vector<128x128xf32>
    %c0_78 = arith.constant 0 : index
    %c0_79 = arith.constant 0 : index
    %51 = vector.load %arg10[%c0_78, %c0_79] : memref<128x128xf32, #tpu.memory_space<vmem>>, vector<128x128xf32>
    tpu.vector_store %arg10[%c0_78, %c0_79], %50 {strides = array<i32>} : memref<128x128xf32, #tpu.memory_space<vmem>>, vector<128x128xf32>,
    %c2_80 = arith.constant 2 : index
    %c0_81 = arith.constant 0 : index
    %c0_82 = arith.constant 0 : index
    %52 = vector.load %arg9[%c2_80, %c0_81, %c0_82] : memref<10x18x4xbf16, #tpu.memory_space<vmem>>, vector<8x16x4xbf16>
    %53 = vector.shape_cast %52 : vector<8x16x4xbf16> to vector<128x4xbf16>
    %c2_83 = arith.constant 2 : index
    %c0_84 = arith.constant 0 : index
    %c0_85 = arith.constant 0 : index
    %c0_86 = arith.constant 0 : index
    %54 = vector.load %arg5[%c2_83, %c0_84, %c0_85, %c0_86] : memref<3x3x4x128xbf16, #tpu.memory_space<vmem>>, vector<1x1x4x128xbf16>
    %55 = vector.shape_cast %54 : vector<1x1x4x128xbf16> to vector<4x128xbf16>
    %cst_87 = arith.constant dense<0.000000e+00> : vector<128x128xf32>
    %56 = tpu.matmul %53, %55, %cst_87 {dimension_numbers = #tpu.dot_dimension_numbers<[1], [0], [0], [1], [0, 0, 1, 1], [], []>} : vector<128x4xbf16>, vector<4x128xbf16>, vector<128x128xf32> -> vector<128x128xf32>
    %c0_88 = arith.constant 0 : index
    %c0_89 = arith.constant 0 : index
    %57 = vector.load %arg10[%c0_88, %c0_89] : memref<128x128xf32, #tpu.memory_space<vmem>>, vector<128x128xf32>
    %58 = arith.addf %57, %56 : vector<128x128xf32>
    %c0_90 = arith.constant 0 : index
    %c0_91 = arith.constant 0 : index
    %59 = vector.load %arg10[%c0_90, %c0_91] : memref<128x128xf32, #tpu.memory_space<vmem>>, vector<128x128xf32>
    tpu.vector_store %arg10[%c0_90, %c0_91], %58 {strides = array<i32>} : memref<128x128xf32, #tpu.memory_space<vmem>>, vector<128x128xf32>,
    %c2_92 = arith.constant 2 : index
    %c1_93 = arith.constant 1 : index
    %c0_94 = arith.constant 0 : index
    %60 = vector.load %arg9[%c2_92, %c1_93, %c0_94] : memref<10x18x4xbf16, #tpu.memory_space<vmem>>, vector<8x16x4xbf16>
    %61 = vector.shape_cast %60 : vector<8x16x4xbf16> to vector<128x4xbf16>
    %c2_95 = arith.constant 2 : index
    %c1_96 = arith.constant 1 : index
    %c0_97 = arith.constant 0 : index
    %c0_98 = arith.constant 0 : index
    %62 = vector.load %arg5[%c2_95, %c1_96, %c0_97, %c0_98] : memref<3x3x4x128xbf16, #tpu.memory_space<vmem>>, vector<1x1x4x128xbf16>
    %63 = vector.shape_cast %62 : vector<1x1x4x128xbf16> to vector<4x128xbf16>
    %cst_99 = arith.constant dense<0.000000e+00> : vector<128x128xf32>
    %64 = tpu.matmul %61, %63, %cst_99 {dimension_numbers = #tpu.dot_dimension_numbers<[1], [0], [0], [1], [0, 0, 1, 1], [], []>} : vector<128x4xbf16>, vector<4x128xbf16>, vector<128x128xf32> -> vector<128x128xf32>
    %c0_100 = arith.constant 0 : index
    %c0_101 = arith.constant 0 : index
    %65 = vector.load %arg10[%c0_100, %c0_101] : memref<128x128xf32, #tpu.memory_space<vmem>>, vector<128x128xf32>
    %66 = arith.addf %65, %64 : vector<128x128xf32>
    %c0_102 = arith.constant 0 : index
    %c0_103 = arith.constant 0 : index
    %67 = vector.load %arg10[%c0_102, %c0_103] : memref<128x128xf32, #tpu.memory_space<vmem>>, vector<128x128xf32>
    tpu.vector_store %arg10[%c0_102, %c0_103], %66 {strides = array<i32>} : memref<128x128xf32, #tpu.memory_space<vmem>>, vector<128x128xf32>,
    %c2_104 = arith.constant 2 : index
    %c2_105 = arith.constant 2 : index
    %c0_106 = arith.constant 0 : index
    %68 = vector.load %arg9[%c2_104, %c2_105, %c0_106] : memref<10x18x4xbf16, #tpu.memory_space<vmem>>, vector<8x16x4xbf16>
    %69 = vector.shape_cast %68 : vector<8x16x4xbf16> to vector<128x4xbf16>
    %c2_107 = arith.constant 2 : index
    %c2_108 = arith.constant 2 : index
    %c0_109 = arith.constant 0 : index
    %c0_110 = arith.constant 0 : index
    %70 = vector.load %arg5[%c2_107, %c2_108, %c0_109, %c0_110] : memref<3x3x4x128xbf16, #tpu.memory_space<vmem>>, vector<1x1x4x128xbf16>
    %71 = vector.shape_cast %70 : vector<1x1x4x128xbf16> to vector<4x128xbf16>
    %cst_111 = arith.constant dense<0.000000e+00> : vector<128x128xf32>
    %72 = tpu.matmul %69, %71, %cst_111 {dimension_numbers = #tpu.dot_dimension_numbers<[1], [0], [0], [1], [0, 0, 1, 1], [], []>} : vector<128x4xbf16>, vector<4x128xbf16>, vector<128x128xf32> -> vector<128x128xf32>
    %c0_112 = arith.constant 0 : index
    %c0_113 = arith.constant 0 : index
    %73 = vector.load %arg10[%c0_112, %c0_113] : memref<128x128xf32, #tpu.memory_space<vmem>>, vector<128x128xf32>
    %74 = arith.addf %73, %72 : vector<128x128xf32>
    %c0_114 = arith.constant 0 : index
    %c0_115 = arith.constant 0 : index
    %75 = vector.load %arg10[%c0_114, %c0_115] : memref<128x128xf32, #tpu.memory_space<vmem>>, vector<128x128xf32>
    tpu.vector_store %arg10[%c0_114, %c0_115], %74 {strides = array<i32>} : memref<128x128xf32, #tpu.memory_space<vmem>>, vector<128x128xf32>,
    %c0_116 = arith.constant 0 : index
    %c0_117 = arith.constant 0 : index
    %76 = vector.load %arg10[%c0_116, %c0_117] : memref<128x128xf32, #tpu.memory_space<vmem>>, vector<128x128xf32>
    %c0_118 = arith.constant 0 : index
    %c0_119 = arith.constant 0 : index
    %77 = vector.load %arg6[%c0_118, %c0_119] : memref<1x128xf32, #tpu.memory_space<vmem>>, vector<1x128xf32>
    %78 = vector.broadcast %77 : vector<1x128xf32> to vector<128x128xf32>
    %79 = arith.mulf %76, %78 : vector<128x128xf32>
    %c0_120 = arith.constant 0 : index
    %c0_121 = arith.constant 0 : index
    %80 = vector.load %arg7[%c0_120, %c0_121] : memref<1x128xf32, #tpu.memory_space<vmem>>, vector<1x128xf32>
    %81 = vector.broadcast %80 : vector<1x128xf32> to vector<128x128xf32>
    %82 = arith.addf %79, %81 : vector<128x128xf32>
    %cst_122 = arith.constant 0.000000e+00 : f32
    %83 = vector.broadcast %cst_122 : f32 to vector<128x128xf32>
    %84 = arith.cmpf ogt, %82, %83 : vector<128x128xf32>
    %cst_123 = arith.constant 1.000000e-01 : f32
    %85 = vector.broadcast %cst_123 : f32 to vector<128x128xf32>
    %86 = arith.mulf %85, %82 : vector<128x128xf32>
    %87 = arith.select %84, %82, %86 : vector<128x128xi1>, vector<128x128xf32>
    %88 = vector.shape_cast %87 : vector<128x128xf32> to vector<8x16x128xf32>
    %89 = arith.truncf %88 : vector<8x16x128xf32> to vector<8x16x128xbf16>
    %c0_124 = arith.constant 0 : index
    %c0_125 = arith.constant 0 : index
    %c0_126 = arith.constant 0 : index
    %c0_127 = arith.constant 0 : index
    %90 = vector.load %arg8[%c0_124, %c0_125, %c0_126, %c0_127] : memref<1x8x16x128xbf16, #tpu.memory_space<vmem>>, vector<1x8x16x128xbf16>
    %91 = vector.shape_cast %90 : vector<1x8x16x128xbf16> to vector<8x16x128xbf16>
    %92 = vector.shape_cast %89 : vector<8x16x128xbf16> to vector<1x8x16x128xbf16>
    tpu.vector_store %arg8[%c0_124, %c0_125, %c0_126, %c0_127], %92 {strides = array<i32>} : memref<1x8x16x128xbf16, #tpu.memory_space<vmem>>, vector<1x8x16x128xbf16>,
    return
  }
  func.func @transform_0(%arg0: i32, %arg1: i32, %arg2: i32) -> (i32, i32, i32, i32) {
    %c0_i32 = arith.constant 0 : i32
    %c0_i32_0 = arith.constant 0 : i32
    %c0_i32_1 = arith.constant 0 : i32
    return %arg0, %arg1, %c0_i32, %c0_i32_0 : i32, i32, i32, i32
  }
  func.func @transform_1(%arg0: i32, %arg1: i32, %arg2: i32) -> (i32, i32, i32, i32, i32) {
    %c0_i32 = arith.constant 0 : i32
    %c0_i32_0 = arith.constant 0 : i32
    %c0_i32_1 = arith.constant 0 : i32
    %c0_i32_2 = arith.constant 0 : i32
    return %arg0, %arg1, %c0_i32, %c0_i32_0, %c0_i32_1 : i32, i32, i32, i32, i32
  }
  func.func @transform_2(%arg0: i32, %arg1: i32, %arg2: i32) -> (i32, i32, i32, i32) {
    %c0_i32 = arith.constant 0 : i32
    %c0_i32_0 = arith.constant 0 : i32
    %c0_i32_1 = arith.constant 0 : i32
    %c0_i32_2 = arith.constant 0 : i32
    return %c0_i32, %c0_i32_0, %c0_i32_1, %arg2 : i32, i32, i32, i32
  }
  func.func @transform_3(%arg0: i32, %arg1: i32, %arg2: i32) -> (i32, i32) {
    %c0_i32 = arith.constant 0 : i32
    %c0_i32_0 = arith.constant 0 : i32
    return %c0_i32, %arg2 : i32, i32
  }
  func.func @transform_4(%arg0: i32, %arg1: i32, %arg2: i32) -> (i32, i32) {
    %c0_i32 = arith.constant 0 : i32
    %c0_i32_0 = arith.constant 0 : i32
    return %c0_i32, %arg2 : i32, i32
  }
  func.func @transform_5(%arg0: i32, %arg1: i32, %arg2: i32) -> (i32, i32, i32, i32) {
    %c0_i32 = arith.constant 0 : i32
    %c0_i32_0 = arith.constant 0 : i32
    return %arg0, %arg1, %c0_i32, %arg2 : i32, i32, i32, i32
  }
}

</mosaic_0001>

<bundles_post_ra>
// kernel: tpu_custom_call.1
= control target key start
LH: loop header
LB: loop body
LE: loop exit
PB: predicated region body
PF: predicated region fallthrough
CT: control target
= control target key end

     0   :  { %10 = vsyncpa [#allocation5], 0  ;;  %s5256_s0 = inlined_call_operand.vmem [shape: bf16[2,18,18,4], index: 0, kind: input, shape index: {}]   ;;  %s5257_s1 = inlined_call_operand.vmem [shape: bf16[2,2,2,18,4], index: 1, kind: input, shape index: {}]   ;;  %s5258_s2 = inlined_call_operand.vmem [shape: bf16[3,3,4,128], index: 2, kind: input, shape index: {}]   ;;  %s5259_s3 = inlined_call_operand.vmem [shape: f32[1,128], index: 3, kind: input, shape index: {}]   ;;  %s5260_s4 = inlined_call_operand.vmem [shape: f32[1,128], index: 4, kind: input, shape index: {}]   ;;  %s5261_s5 = inlined_call_operand.hbm [shape: bf16[2,16,16,128], index: 5, kind: output, shape index: {}]  }
   0x1   :  { %12 = vsyncpa [#allocation5 + $0x1], 0  ;;  %s4366_s18 = smov 0   ;;  %s4368_s19 = smov 0  }
   0x2   :  { %s4370_s20 = smov 0   ;;  %s4372_s21 = smov 0  }
   0x3   :  { %s4374_s22 = smov 0   ;;  %s4376_s23 = smov 0  }
   0x4   :  { %s4378_s24 = smov 0   ;;  %s4380_s25 = smov 0  }
   0x5 LB: > { %s3606_s26 = sadd.s32 4294967295, %s4331_s25   ;;  %s3607_s27 = sadd.s32 4294967294, %s4331_s25   ;;  %s4331_s25 = sphi %s4380_s25, %s18_s25   ;;  %s4327_s24 = sphi %s4378_s24, %s5308_s24   ;;  %s4323_s23 = sphi %s4376_s23, %s5307_s23   ;;  %s4319_s22 = sphi %s4374_s22, %s5306_s22   ;;  %s4315_s21 = sphi %s4372_s21, %s5305_s21   ;;  %s4311_s20 = sphi %s4370_s20, %s5304_s20   ;;  %s4307_s19 = sphi %s4368_s19, %s5303_s19   ;;  %s4303_s18 = sphi %s4366_s18, %s5302_s18  }
   0x6   : > { %s33_s28 = sadd.s32 1, %s4323_s23  ;;  %s37_s29 = sadd.s32 1, %s4327_s24 }
   0x7   : > { %p35_p0 = scmp.ge.s32.totalorder %s33_s28, 2  ;;  %p192_p1 = scmp.ne.s32.totalorder %s4311_s20, %s4307_s19 }
   0x8   : > { %p193_p2 = scmp.eq.s32.totalorder %s3606_s26, 3  ;;  %p198_p5 = scmp.ne.s32.totalorder %s4307_s19, %s4303_s18 }
   0x9   : > { %s5310_s28 = smov (%p35_p0, %s33_s28), 0  ;;  %s5312_s29 = smov (!%p35_p0, %s37_s29), %s4327_s24 }
   0xa   : > { %s176_s30 = ssub.s32 %s4323_s23, %s5310_s28  ;;  %p4417_p3 = por %p193_p2, %p192_p1 }
   0xb   : > { %p39_p4 = scmp.ge.s32.totalorder %s5312_s29, 2  ;;  %p199_p6 = scmp.eq.s32.totalorder %s3607_s27, 3 }
   0xc   : > { %p3613_p7 = scmp.ge.s32.totalorder %s4331_s25, 1  ;;  %p272_p9 = scmp.lt.s32.totalorder %s4331_s25, 5 }
   0xd   : > { %s5314_s29 = smov (%p39_p4, %s5312_s29), 0  ;;  %p4426_p8 = por %p199_p6, %p198_p5 }
   0xe   : > { %s175_s8 = ssub.s32 %s4327_s24, %s5314_s29  ;;  %s182_s9 = sadd.s32 1, %s4311_s20 }
   0xf   : > { %s177_s10 = sor.u32 %s176_s30, %s175_s8  ;;  %p273_p10 = pnand %p3613_p7, %p272_p9 }
  0x10   : > { %p180_p11 = scmp.eq.s32.totalorder %s177_s10, 0 }
  0x11   : > { %276 = sbr.rel (%p273_p10) target bundleno = 428 (0x1ac), region = 40 }
  0x12   : > { %s4435_s11 = scalar_select %p180_p11, %s4311_s20, %s182_s9  }
  0x16   : > { %v450_v0 = vld [vmem:[%s5258_s2] sm:$0x3]  ;;  %vm516_vm0 = vcmask 1041408   ;;  %s3615_s14 = sshll.u32 %s4315_s21, 3  ;;  %p335_p12 = scmp.lt.s32.totalorder %s4319_s22, 1  ;;  %vm395_vm1 = vcmask 27648  }
  0x17   : > { %4129 = vmatprep.subr.msk.bf16.mxu1 %vm516_vm0, %v450_v0  ;;  %4128 = vmatprep.subr.msk.bf16.mxu0 %vm516_vm0, %v450_v0  ;;  %v518_v1 = vsel %vm516_vm0, %v450_v0, 0  ;;  %p337_p13 = scmp.lt.s32.totalorder %s3615_s14, 17  ;;  %v3634_v2 = vld [vmem:[%s5258_s2 + $0x2] sm:$0x3]  ;;  %v3659_v3 = vld [vmem:[%s5258_s2 + $0x4] sm:$0x3] }
  0x18   : > { %4127 = vmatpush3.bf16.msra.mxu1 %v518_v1  ;;  %3965 = vmatpush3.bf16.msra.mxu0 %v518_v1  ;;  %s4449_s17 = scalar_select %p335_p12, %s4319_s22, 1  ;;  %vm491_vm2 = vcmask 31744   ;;  %v4463_v4 = vsel %vm516_vm0, %v3634_v2, 0  ;;  %v4466_v5 = vsel %vm516_vm0, %v3659_v3, 0  ;;  %vm398_vm3 = vcmask 24576  }
  0x19   : > { %s5316_s14 = smov (!%p337_p13, %s3615_s14), 17  ;;  %4130 = vmatprep.subr.msk.bf16.mxu1 %vm516_vm0, %v3634_v2  ;;  %4131 = vmatprep.subr.msk.bf16.mxu0 %vm516_vm0, %v3659_v3  ;;  %v3676_v23 = vld [vmem:[%s5258_s2 + $0x6] sm:$0x3]  ;;  %v3693_v25 = vld [vmem:[%s5258_s2 + $0x8] sm:$0x3]  ;;  %vm1098_vm4 = vcmask 1042432  }
  0x1a   : > { %s4139_s30 = smul.u32 54, %s4449_s17  ;;  %v4522_v32 = vld [vmem:[%s5258_s2 + $0xa] sm:$0x3]  ;;  %v4530_v34 = vld [vmem:[%s5258_s2 + $0xc] sm:$0x3]  ;;  %vm1099_vm5 = vcmask 1046532  }
  0x1b   : > { %s4138_s8 = smul.u32 3, %s5316_s14  ;;  %v4535_v36 = vld [vmem:[%s5258_s2 + $0xe] sm:$0x3]  ;;  %v4539_v38 = vsel %vm516_vm0, %v3676_v23, 0  ;;  %v4544_v39 = vld [vmem:[%s5258_s2 + $0x10] sm:$0x3]  ;;  %vm4576_vm8 = vmor %vm1098_vm4, %vm1099_vm5 }
  0x1c   : > { %vm657_vm6 = vsmask.f32 3328  ;;  %vm658_vm7 = vsmask.f32 7440  ;;  %v4548_v41 = vsel %vm516_vm0, %v3693_v25, 0  ;;  %v4553_v43 = vsel %vm516_vm0, %v4522_v32, 0 }
  0x1d   : > { %s341_s9 = sadd.s32 %s4139_s30, %s4138_s8  ;;  %v4559_v45 = vsel %vm516_vm0, %v4530_v34, 0  ;;  %v4565_v47 = vsel %vm516_vm0, %v4535_v36, 0  ;;  %v4571_v49 = vsel %vm516_vm0, %v4544_v39, 0  ;;  %vm4584_vm9 = vmor %vm657_vm6, %vm658_vm7  ;;  %p352_p0 = scmp.lt.s32.totalorder %s4315_s21, 1 }
  0x1e   : > { %s3616_s10 = sshll.u32 %s341_s9, 2  ;;  %s4141_s26 = smul.u32 12, %s4449_s17 }
  0x1f   : > { %s4460_s15 = scalar_lea.vmem %s5256_s0, %s3616_s10  ;;  %s4333_s14 = smov [#allocation4]  }
  0x20   : > { %v371_v6 = vld [vmem:[%s4460_s15] sm:$0xf]  ;;  %v372_v7 = vld [vmem:[%s4460_s15 + $0x4] sm:$0xf]  ;;  %v383_v8 = vld [vmem:[%s4460_s15 + $0x30] sm:$0xf] }
  0x21   : > { %396 = vst.msk [vmem:[#allocation2] sm:$0xf] %vm395_vm1, %v371_v6  ;;  %397 = vst.msk [vmem:[#allocation2 + $0x4] sm:$0xf] %vm395_vm1, %v372_v7  ;;  %v384_v9 = vld [vmem:[%s4460_s15 + $0x34] sm:$0xf] }
  0x22   : > { %409 = vst.msk [vmem:[#allocation2 + $0x30] sm:$0xf] %vm395_vm1, %v383_v8  ;;  %v374_v10 = vld [vmem:[%s4460_s15 + $0xc] sm:$0xf]  ;;  %v375_v11 = vld [vmem:[%s4460_s15 + $0x10] sm:$0xf] }
  0x23   : > { %410 = vst.msk [vmem:[#allocation2 + $0x34] sm:$0xf] %vm395_vm1, %v384_v9  ;;  %400 = vst.msk [vmem:[#allocation2 + $0xc] sm:$0xf] %vm395_vm1, %v374_v10  ;;  %v386_v12 = vld [vmem:[%s4460_s15 + $0x3c] sm:$0xf] }
  0x24   : > { %401 = vst.msk [vmem:[#allocation2 + $0x10] sm:$0xf] %vm395_vm1, %v375_v11  ;;  %v387_v13 = vld [vmem:[%s4460_s15 + $0x40] sm:$0xf]  ;;  %v377_v14 = vld [vmem:[%s4460_s15 + $0x18] sm:$0xf] }
  0x25   : > { %412 = vst.msk [vmem:[#allocation2 + $0x3c] sm:$0xf] %vm395_vm1, %v386_v12  ;;  %413 = vst.msk [vmem:[#allocation2 + $0x40] sm:$0xf] %vm395_vm1, %v387_v13  ;;  %v378_v15 = vld [vmem:[%s4460_s15 + $0x1c] sm:$0xf] }
  0x26   : > { %403 = vst.msk [vmem:[#allocation2 + $0x18] sm:$0xf] %vm395_vm1, %v377_v14  ;;  %v389_v16 = vld [vmem:[%s4460_s15 + $0x48] sm:$0xf]  ;;  %v390_v17 = vld [vmem:[%s4460_s15 + $0x4c] sm:$0xf] }
  0x27   : > { %404 = vst.msk [vmem:[#allocation2 + $0x1c] sm:$0xf] %vm395_vm1, %v378_v15  ;;  %415 = vst.msk [vmem:[#allocation2 + $0x48] sm:$0xf] %vm395_vm1, %v389_v16  ;;  %v380_v18 = vld [vmem:[%s4460_s15 + $0x24] sm:$0xf] }
  0x28   : > { %416 = vst.msk [vmem:[#allocation2 + $0x4c] sm:$0xf] %vm395_vm1, %v390_v17  ;;  %v381_v19 = vld [vmem:[%s4460_s15 + $0x28] sm:$0xf]  ;;  %v392_v20 = vld [vmem:[%s4460_s15 + $0x54] sm:$0xf] }
  0x29   : > { %406 = vst.msk [vmem:[#allocation2 + $0x24] sm:$0xf] %vm395_vm1, %v380_v18  ;;  %407 = vst.msk [vmem:[#allocation2 + $0x28] sm:$0xf] %vm395_vm1, %v381_v19  ;;  %v393_v21 = vld [vmem:[%s4460_s15 + $0x58] sm:$0xf] }
  0x2a   : > { %418 = vst.msk [vmem:[#allocation2 + $0x54] sm:$0xf] %vm395_vm1, %v392_v20  ;;  %v373_v22 = vld [vmem:[%s4460_s15 + $0x8] sm:$0x1]  ;;  %v376_v24 = vld [vmem:[%s4460_s15 + $0x14] sm:$0x1] }
  0x2b   : > { %419 = vst.msk [vmem:[#allocation2 + $0x58] sm:$0xf] %vm395_vm1, %v393_v21  ;;  %v379_v26 = vld [vmem:[%s4460_s15 + $0x20] sm:$0x1]  ;;  %v382_v27 = vld [vmem:[%s4460_s15 + $0x2c] sm:$0x1] }
  0x2c   : > { %399 = vst.msk [vmem:[#allocation2 + $0x8] sm:$0x1] %vm398_vm3, %v373_v22  ;;  %402 = vst.msk [vmem:[#allocation2 + $0x14] sm:$0x1] %vm398_vm3, %v376_v24  ;;  %v385_v28 = vld [vmem:[%s4460_s15 + $0x38] sm:$0x1] }
  0x2d   : > { %405 = vst.msk [vmem:[#allocation2 + $0x20] sm:$0x1] %vm398_vm3, %v379_v26  ;;  %408 = vst.msk [vmem:[#allocation2 + $0x2c] sm:$0x1] %vm398_vm3, %v382_v27  ;;  %v388_v29 = vld [vmem:[%s4460_s15 + $0x44] sm:$0x1] }
  0x2e   : > { %411 = vst.msk [vmem:[#allocation2 + $0x38] sm:$0x1] %vm398_vm3, %v385_v28  ;;  %v391_v30 = vld [vmem:[%s4460_s15 + $0x50] sm:$0x1]  ;;  %v394_v31 = vld [vmem:[%s4460_s15 + $0x5c] sm:$0x1] }
  0x2f   : > { %v4215_v33 = vld [vmem:[#allocation2] sm:$0xff]   ;;  %414 = vst.msk [vmem:[#allocation2 + $0x44] sm:$0x1] %vm398_vm3, %v388_v29  ;;  %417 = vst.msk [vmem:[#allocation2 + $0x50] sm:$0x1] %vm398_vm3, %v391_v30  ;;  %v4216_v35 = vld [vmem:[#allocation2 + $0x30] sm:$0xff]  }
  0x30   : > { %420 = vst.msk [vmem:[#allocation2 + $0x5c] sm:$0x1] %vm398_vm3, %v394_v31  ;;  %3966 = vmatprep.mubr.msk.bf16.mxu0 %vm491_vm2, %v4215_v33  ;;  %v4217_v37 = vld [vmem:[#allocation2 + $0xc] sm:$0xff]   ;;  %3974 = vmatprep.mubr.msk.bf16.mxu1 %vm491_vm2, %v4216_v35  ;;  %v4218_v40 = vld [vmem:[#allocation2 + $0x3c] sm:$0xff]   ;;  %v4221_v46 = vld [vmem:[#allocation2 + $0x24] sm:$0xff]   ;;  %s4658_s16 = scalar_select %p352_p0, %s4315_s21, 1 }
  0x31   : > { %3967 = vmatmul.mubr.msk.bf16.vlgmr.msra.gmra.mxu0 %vm491_vm2, %v4217_v37  ;;  %v4219_v42 = vld [vmem:[#allocation2 + $0x18] sm:$0xff]   ;;  %3975 = vmatmul.mubr.msk.bf16.vlgmr.msra.gmra.mxu1 %vm491_vm2, %v4218_v40  ;;  %v4220_v44 = vld [vmem:[#allocation2 + $0x48] sm:$0xff]   ;;  %v633_v50 = vld [vmem:[#allocation2] sm:$0xf] }
  0x32   : > { %4001 = vmatpush3.bf16.msra.mxu0 %v4466_v5  ;;  %3983 = vmatpush3.bf16.msra.mxu1 %v4463_v4  ;;  %v4222_v48 = vld [vmem:[#allocation2 + $0x54] sm:$0xff]   ;;  %v634_v51 = vld [vmem:[#allocation2 + $0x4] sm:$0xf]  ;;  %v661_v53 = vshrl.u32 %v633_v50, 16  ;;  %v664_v54 = vshll.u32 %v633_v50, 16  ;;  %s4140_s27 = smul.u32 6, %s4658_s16 }
  0x33   : > { %3970 = vmatprep.mubr.msk.bf16.mxu0 %vm491_vm2, %v4219_v42  ;;  %3978 = vmatprep.mubr.msk.bf16.mxu1 %vm491_vm2, %v4220_v44  ;;  %v635_v52 = vld [vmem:[#allocation2 + $0x8] sm:$0x1]  ;;  %v670_v55 = vshll.u32 %v634_v51, 16  ;;  %v674_v56 = vshrl.u32 %v634_v51, 16  ;;  %v1050_v57 = vld [vmem:[#allocation2] sm:$0xe] }
  0x34   : > { %4132 = vmatprep.subr.msk.bf16.mxu1 %vm516_vm0, %v3676_v23  ;;  %4133 = vmatprep.subr.msk.bf16.mxu0 %vm516_vm0, %v3693_v25  ;;  %v680_v58 = vshll.u32 %v635_v52, 16  ;;  %v1051_v59 = vld [vmem:[#allocation2 + $0x4] sm:$0xf]  ;;  %v1052_v60 = vld [vmem:[#allocation2 + $0x8] sm:$0x1]  ;;  %v3651_v61 = vrot.slane %v1050_v57, 9  ;;  %s4682_s30 = sadd.s32 %s4141_s26, %s4140_s27 }
  0x35   : > { %v663_v62 = vrot.slane %v661_v53, 4  ;;  %v666_v63 = vrot.slane %v664_v54, 5  ;;  %v672_v0 = vrot.slane %v670_v55, 5  ;;  %v676_v1 = vrot.slane %v674_v56, 4  ;;  %v636_v3 = vld [vmem:[#allocation2 + $0xc] sm:$0xf] }
  0x36   : > { %v682_v4 = vrot.slane %v680_v58, 5  ;;  %v1103_v5 = vrot.slane %v1051_v59, 5  ;;  %v1106_v6 = vrot.slane %v1052_v60, 5  ;;  %v637_v7 = vld [vmem:[#allocation2 + $0x10] sm:$0xf]  ;;  %v685_v8 = vshrl.u32 %v636_v3, 16 }
  0x37   : > { %v667_v9 = vor.u32 %v666_v63, %v663_v62  ;;  %v677_v10 = vor.u32 %v676_v1, %v672_v0  ;;  %v638_v11 = vld [vmem:[#allocation2 + $0x14] sm:$0x1]  ;;  %v688_v12 = vshll.u32 %v636_v3, 16  ;;  %v694_v13 = vshll.u32 %v637_v7, 16  ;;  %v1053_v14 = vld [vmem:[#allocation2 + $0xc] sm:$0xe] }
  0x38   : > { %v1104_v16 = vsel %vm4576_vm8, %v3651_v61, %v1103_v5  ;;  %v1105_v17 = vrot.slane %v1103_v5, 4  ;;  %v687_v18 = vrot.slane %v685_v8, 4  ;;  %v698_v19 = vshrl.u32 %v637_v7, 16  ;;  %v1054_v20 = vld [vmem:[#allocation2 + $0x10] sm:$0xf]  ;;  %s3617_s17 = sshll.u32 %s4682_s30, 2 }
  0x39   : > { %3971 = vmatmul.mubr.msk.bf16.gmra.mxu0 %vm491_vm2, %v4221_v46  ;;  %3979 = vmatmul.mubr.msk.bf16.gmra.mxu1 %vm491_vm2, %v4222_v48  ;;  %v668_v21 = vrot.slane %v667_v9, 4  ;;  %v678_v22 = vrot.slane %v677_v10, 4  ;;  %v690_v23 = vrot.slane %v688_v12, 5  ;;  %v696_v24 = vrot.slane %v694_v13, 5  ;;  %v1055_v25 = vld [vmem:[#allocation2 + $0x14] sm:$0x1]  ;;  %s4695_s10 = scalar_lea.vmem %s5257_s1, %s3617_s17 }
  0x3a   : > { %v1107_v26 = vsel %vm4576_vm8, %v1105_v17, %v1106_v6  ;;  %v700_v27 = vrot.slane %v698_v19, 4  ;;  %v704_v28 = vshll.u32 %v638_v11, 16  ;;  %v3652_v29 = vrot.slane %v1053_v14, 9  ;;  %v639_v30 = vld [vmem:[#allocation2 + $0x18] sm:$0xf]  ;;  %s326_s16 = sand.u32 1, %s4307_s19  }
  0x3b   : > { %v673_v31 = vsel %vm4584_vm9, %v668_v21, %v672_v0  ;;  %v683_v33 = vsel %vm4584_vm9, %v678_v22, %v682_v4  ;;  %v3660_v35 = vcombine.low %v1104_v16, %v1107_v26  ;;  %v691_v37 = vor.u32 %v690_v23, %v687_v18  ;;  %v640_v40 = vld [vmem:[#allocation2 + $0x1c] sm:$0xf]  ;;  %v641_v50 = vld [vmem:[#allocation2 + $0x20] sm:$0x1]  ;;  %v1056_v55 = vld [vmem:[#allocation2 + $0x18] sm:$0xe] }
  0x3c   : > { %v3635_v42 = vcombine.low %v673_v31, %v683_v33  ;;  %v701_v44 = vor.u32 %v700_v27, %v696_v24  ;;  %v706_v46 = vrot.slane %v704_v28, 5  ;;  %v1110_v48 = vrot.slane %v1054_v20, 5  ;;  %v1057_v60 = vld [vmem:[#allocation2 + $0x1c] sm:$0xf]  ;;  %v1058_v1 = vld [vmem:[#allocation2 + $0x20] sm:$0x1] }
  0x3d   : > { %4002 = vmatprep.mubr.msk.bf16.mxu0 %vm491_vm2, %v3660_v35  ;;  %v692_v51 = vrot.slane %v691_v37, 4  ;;  %v1113_v52 = vrot.slane %v1055_v25, 5  ;;  %v709_v53 = vshrl.u32 %v639_v30, 16  ;;  %v712_v54 = vshll.u32 %v639_v30, 16  ;;  %v642_v7 = vld [vmem:[#allocation2 + $0x24] sm:$0xf] }
  0x3e   : > { %3984 = vmatprep.mubr.msk.bf16.mxu1 %vm491_vm2, %v3635_v42  ;;  %v702_v56 = vrot.slane %v701_v44, 4  ;;  %v1111_v57 = vsel %vm4576_vm8, %v3652_v29, %v1110_v48  ;;  %v1112_v58 = vrot.slane %v1110_v48, 4  ;;  %v718_v59 = vshll.u32 %v640_v40, 16  ;;  %v643_v12 = vld [vmem:[#allocation2 + $0x28] sm:$0xf]  ;;  %s5145_s26 = sshll.u32 %s326_s16, 6 }
  0x3f   : > { %v697_v61 = vsel %vm4584_vm9, %v692_v51, %v696_v24  ;;  %v711_v62 = vrot.slane %v709_v53, 4  ;;  %v714_v63 = vrot.slane %v712_v54, 5  ;;  %v722_v0 = vshrl.u32 %v640_v40, 16  ;;  %v644_v18 = vld [vmem:[#allocation2 + $0x2c] sm:$0x1]  ;;  %s5158_s27 = scalar_lea.vmem [#allocation4], %s5145_s26 }
  0x40   : > { %v707_v3 = vsel %vm4584_vm9, %v702_v56, %v706_v46  ;;  %v1114_v4 = vsel %vm4576_vm8, %v1112_v58, %v1113_v52  ;;  %v720_v5 = vrot.slane %v718_v59, 5  ;;  %v728_v6 = vshll.u32 %v641_v50, 16  ;;  %v1059_v23 = vld [vmem:[#allocation2 + $0x24] sm:$0xe]  ;;  %v1060_v28 = vld [vmem:[#allocation2 + $0x28] sm:$0xf] }
  0x41   : > { %v3636_v8 = vcombine.low %v697_v61, %v707_v3  ;;  %v3661_v9 = vcombine.low %v1111_v57, %v1114_v4  ;;  %v715_v10 = vor.u32 %v714_v63, %v711_v62  ;;  %v724_v11 = vrot.slane %v722_v0, 4  ;;  %v1061_v35 = vld [vmem:[#allocation2 + $0x2c] sm:$0x1]  ;;  %v645_v42 = vld [vmem:[#allocation2 + $0x30] sm:$0xf]  ;;  %s3835_s30 = sshll.u32 %s4315_s21, 4 }
  0x42   : > { %v730_v13 = vrot.slane %v728_v6, 5  ;;  %v3653_v14 = vrot.slane %v1056_v55, 9  ;;  %v1117_v16 = vrot.slane %v1057_v60, 5  ;;  %v1120_v17 = vrot.slane %v1058_v1, 5  ;;  %v646_v51 = vld [vmem:[#allocation2 + $0x34] sm:$0xf] }
  0x43   : > { %3985 = vmatmul.mubr.msk.bf16.vlgmr.msra.gmra.mxu1 %vm491_vm2, %v3636_v8  ;;  %4003 = vmatmul.mubr.msk.bf16.vlgmr.msra.gmra.mxu0 %vm491_vm2, %v3661_v9  ;;  %v716_v19 = vrot.slane %v715_v10, 4  ;;  %v725_v20 = vor.u32 %v724_v11, %v720_v5  ;;  %v733_v21 = vshrl.u32 %v642_v7, 16  ;;  %v736_v22 = vshll.u32 %v642_v7, 16  ;;  %v647_v55 = vld [vmem:[#allocation2 + $0x38] sm:$0x1]  ;;  %s3815_s17 = sshll.u32 %s4319_s22, 5 }
  0x44   : > { %4019 = vmatpush3.bf16.msra.mxu1 %v4539_v38  ;;  %4037 = vmatpush3.bf16.msra.mxu0 %v4548_v41  ;;  %v1118_v24 = vsel %vm4576_vm8, %v3653_v14, %v1117_v16  ;;  %v1119_v25 = vrot.slane %v1117_v16, 4  ;;  %v742_v26 = vshll.u32 %v643_v12, 16  ;;  %v746_v27 = vshrl.u32 %v643_v12, 16  ;;  %v1062_v59 = vld [vmem:[#allocation2 + $0x30] sm:$0xe]  ;;  %s3454_s8 = sadd.s32 %s3835_s30, %s3815_s17  ;;  %s3457_s22 = sshll.u32 %s5158_s27, 4  ;;  %s5200_s22 = int_to_ptr.vmem [resolvable:$true] %s3457_s22 }
  0x45   : > { %v721_v29 = vsel %vm4584_vm9, %v716_v19, %v720_v5  ;;  %v726_v30 = vrot.slane %v725_v20, 4  ;;  %v735_v31 = vrot.slane %v733_v21, 4  ;;  %v738_v33 = vrot.slane %v736_v22, 5  ;;  %4134 = vmatprep.subr.msk.bf16.mxu1 %vm516_vm0, %v4522_v32  ;;  %4135 = vmatprep.subr.msk.bf16.mxu0 %vm516_vm0, %v4530_v34  ;;  %v1063_v0 = vld [vmem:[#allocation2 + $0x34] sm:$0xf]  ;;  %s3816_s21 = sshll.u32 %s3454_s8, 6 }
  0x46   : > { %v1121_v38 = vsel %vm4576_vm8, %v1119_v25, %v1120_v17  ;;  %v744_v41 = vrot.slane %v742_v26, 5  ;;  %v748_v37 = vrot.slane %v746_v27, 4  ;;  %v752_v40 = vshll.u32 %v644_v18, 16  ;;  %v1064_v6 = vld [vmem:[#allocation2 + $0x38] sm:$0x1]  ;;  %s5198_s12 = scalar_lea.hbm %s5261_s5, %s3816_s21  ;;  %s5205_s13 = scalar_lea.sflag [#allocation5], %s326_s16 }
  0x47   : > { %v731_v44 = vsel %vm4584_vm9, %v726_v30, %v730_v13  ;;  %v3662_v46 = vcombine.low %v1118_v24, %v1121_v38  ;;  %v739_v48 = vor.u32 %v738_v33, %v735_v31  ;;  %v3654_v50 = vrot.slane %v1059_v23, 9  ;;  %v648_v11 = vld [vmem:[#allocation2 + $0x3c] sm:$0xf]  ;;  %v649_v17 = vld [vmem:[#allocation2 + $0x40] sm:$0xf]  ;;  %s4239_s15 = scalar_lea.vmem %s5200_s22, 1024 }
  0x48   : > { %v3637_v52 = vcombine.low %v721_v29, %v731_v44  ;;  %v749_v53 = vor.u32 %v748_v37, %v744_v41  ;;  %v754_v32 = vrot.slane %v752_v40, 5  ;;  %v1124_v54 = vrot.slane %v1060_v28, 5  ;;  %v650_v22 = vld [vmem:[#allocation2 + $0x44] sm:$0x1]  ;;  %v1065_v27 = vld [vmem:[#allocation2 + $0x3c] sm:$0xe]  ;;  %p4240_p1 = scmp.ne.s32.totalorder %s5200_s22, %s4239_s15 }
  0x49   : > { %4006 = vmatprep.mubr.msk.bf16.mxu0 %vm491_vm2, %v3662_v46  ;;  %v740_v34 = vrot.slane %v739_v48, 4  ;;  %v1127_v56 = vrot.slane %v1061_v35, 5  ;;  %v757_v57 = vshrl.u32 %v645_v42, 16  ;;  %v760_v58 = vshll.u32 %v645_v42, 16  ;;  %v1066_v33 = vld [vmem:[#allocation2 + $0x40] sm:$0xf] }
  0x4a   : > { %3988 = vmatprep.mubr.msk.bf16.mxu1 %vm491_vm2, %v3637_v52  ;;  %v750_v60 = vrot.slane %v749_v53, 4  ;;  %v1125_v61 = vsel %vm4576_vm8, %v3654_v50, %v1124_v54  ;;  %v1126_v62 = vrot.slane %v1124_v54, 4  ;;  %v766_v63 = vshll.u32 %v646_v51, 16  ;;  %v1067_v40 = vld [vmem:[#allocation2 + $0x44] sm:$0x1]  ;;  %p4241_p2 = pnand %p4240_p1, %p4417_p3  ;;  %s4243_s26 = sshll.u32 %s4333_s14, 4  ;;  %s4244_s26 = int_to_ptr.vmem [resolvable:$false] %s4243_s26 }
  0x4b   : > { %v745_v1 = vsel %vm4584_vm9, %v740_v34, %v744_v41  ;;  %v759_v3 = vrot.slane %v757_v57, 4  ;;  %v762_v4 = vrot.slane %v760_v58, 5  ;;  %v770_v5 = vshrl.u32 %v646_v51, 16  ;;  %v651_v50 = vld [vmem:[#allocation2 + $0x48] sm:$0xf]  ;;  %s4245_s30 = scalar_lea.vmem %s4244_s26, 2048  ;;  %p4246_p5 = scmp.lt.s32.totalorder %s5200_s22, %s4244_s26 }
  0x4c   : > { %v755_v7 = vsel %vm4584_vm9, %v750_v60, %v754_v32  ;;  %v1128_v8 = vsel %vm4576_vm8, %v1126_v62, %v1127_v56  ;;  %v768_v9 = vrot.slane %v766_v63, 5  ;;  %v776_v10 = vshll.u32 %v647_v55, 16  ;;  %v652_v54 = vld [vmem:[#allocation2 + $0x4c] sm:$0xf]  ;;  %v653_v55 = vld [vmem:[#allocation2 + $0x50] sm:$0x1]  ;;  %p4242_p4 = pneg %p4241_p2  ;;  %p4247_p6 = scmp.lt.s32.totalorder %s4245_s30, %s4239_s15 }
  0x4d   : > { %v3638_v12 = vcombine.low %v745_v1, %v755_v7  ;;  %v3663_v13 = vcombine.low %v1125_v61, %v1128_v8  ;;  %v763_v14 = vor.u32 %v762_v4, %v759_v3  ;;  %v772_v16 = vrot.slane %v770_v5, 4  ;;  %v1068_v63 = vld [vmem:[#allocation2 + $0x48] sm:$0xe] }
  0x4e   : > { %v778_v18 = vrot.slane %v776_v10, 5  ;;  %v3655_v19 = vrot.slane %v1062_v59, 9  ;;  %v1131_v20 = vrot.slane %v1063_v0, 5  ;;  %v1134_v21 = vrot.slane %v1064_v6, 5  ;;  %v1069_v0 = vld [vmem:[#allocation2 + $0x4c] sm:$0xf]  ;;  %p4248_p7 = por %p4247_p6, %p4246_p5 }
  0x4f   : > { %3989 = vmatmul.mubr.msk.bf16.gmra.mxu1 %vm491_vm2, %v3638_v12  ;;  %4007 = vmatmul.mubr.msk.bf16.gmra.mxu0 %vm491_vm2, %v3663_v13  ;;  %v764_v23 = vrot.slane %v763_v14, 4  ;;  %v773_v24 = vor.u32 %v772_v16, %v768_v9  ;;  %v781_v25 = vshrl.u32 %v648_v11, 16  ;;  %v784_v26 = vshll.u32 %v648_v11, 16  ;;  %v1070_v6 = vld [vmem:[#allocation2 + $0x50] sm:$0x1] }
  0x50   : > { %v1132_v28 = vsel %vm4576_vm8, %v3655_v19, %v1131_v20  ;;  %v1133_v29 = vrot.slane %v1131_v20, 4  ;;  %v790_v30 = vshll.u32 %v649_v17, 16  ;;  %v794_v31 = vshrl.u32 %v649_v17, 16  ;;  %v654_v11 = vld [vmem:[#allocation2 + $0x54] sm:$0xf]  ;;  %p4249_p9 = pnand %p4248_p7, %p4242_p4 }
  0x51   : > { %v769_v35 = vsel %vm4584_vm9, %v764_v23, %v768_v9  ;;  %v774_v38 = vrot.slane %v773_v24, 4  ;;  %v783_v41 = vrot.slane %v781_v25, 4  ;;  %v786_v37 = vrot.slane %v784_v26, 5 }
  0x52   : > { %v1135_v42 = vsel %vm4576_vm8, %v1133_v29, %v1134_v21  ;;  %v792_v44 = vrot.slane %v790_v30, 5  ;;  %v796_v46 = vrot.slane %v794_v31, 4  ;;  %v800_v48 = vshll.u32 %v650_v22, 16  ;;  %v655_v21 = vld [vmem:[#allocation2 + $0x58] sm:$0xf] }
  0x53   : > { %v779_v51 = vsel %vm4584_vm9, %v774_v38, %v778_v18  ;;  %v3664_v52 = vcombine.low %v1132_v28, %v1135_v42  ;;  %v787_v53 = vor.u32 %v786_v37, %v783_v41  ;;  %v3656_v32 = vrot.slane %v1065_v27, 9  ;;  %v656_v22 = vld [vmem:[#allocation2 + $0x5c] sm:$0x1]  ;;  %v1071_v27 = vld [vmem:[#allocation2 + $0x54] sm:$0xe] }
  0x54   : > { %v3639_v34 = vcombine.low %v769_v35, %v779_v51  ;;  %v797_v56 = vor.u32 %v796_v46, %v792_v44  ;;  %v802_v57 = vrot.slane %v800_v48, 5  ;;  %v1138_v58 = vrot.slane %v1066_v33, 5  ;;  %v1072_v33 = vld [vmem:[#allocation2 + $0x58] sm:$0xf]  ;;  %v1073_v48 = vld [vmem:[#allocation2 + $0x5c] sm:$0x1] }
  0x55   : > { %4010 = vmatprep.mubr.msk.bf16.mxu0 %vm491_vm2, %v3664_v52  ;;  %v788_v59 = vrot.slane %v787_v53, 4  ;;  %v1141_v60 = vrot.slane %v1067_v40, 5  ;;  %v805_v61 = vshrl.u32 %v651_v50, 16  ;;  %v808_v62 = vshll.u32 %v651_v50, 16 }
  0x56   : > { %3992 = vmatprep.mubr.msk.bf16.mxu1 %vm491_vm2, %v3639_v34  ;;  %v798_v1 = vrot.slane %v797_v56, 4  ;;  %v1139_v3 = vsel %vm4576_vm8, %v3656_v32, %v1138_v58  ;;  %v1140_v4 = vrot.slane %v1138_v58, 4  ;;  %v814_v5 = vshll.u32 %v652_v54, 16  ;;  %v1586_v32 = vld [vmem:[#allocation2 + $0xc] sm:$0xf] }
  0x57   : > { %v793_v7 = vsel %vm4584_vm9, %v788_v59, %v792_v44  ;;  %v807_v8 = vrot.slane %v805_v61, 4  ;;  %v810_v9 = vrot.slane %v808_v62, 5  ;;  %v818_v10 = vshrl.u32 %v652_v54, 16  ;;  %v1588_v62 = vld [vmem:[#allocation2 + $0x14] sm:$0x1] }
  0x58   : > { %v803_v12 = vsel %vm4584_vm9, %v798_v1, %v802_v57  ;;  %v1142_v13 = vsel %vm4576_vm8, %v1140_v4, %v1141_v60  ;;  %v816_v14 = vrot.slane %v814_v5, 5  ;;  %v824_v16 = vshll.u32 %v653_v55, 16  ;;  %v1587_v57 = vld [vmem:[#allocation2 + $0x10] sm:$0xf]  ;;  %v1589_v4 = vld [vmem:[#allocation2 + $0x18] sm:$0xf] }
  0x59   : > { %v3640_v17 = vcombine.low %v793_v7, %v803_v12  ;;  %v3665_v18 = vcombine.low %v1139_v3, %v1142_v13  ;;  %v811_v19 = vor.u32 %v810_v9, %v807_v8  ;;  %v820_v20 = vrot.slane %v818_v10, 4  ;;  %v1590_v9 = vld [vmem:[#allocation2 + $0x1c] sm:$0xf] }
  0x5a   : > { %v826_v23 = vrot.slane %v824_v16, 5  ;;  %v3657_v24 = vrot.slane %v1068_v63, 9  ;;  %v1145_v25 = vrot.slane %v1069_v0, 5  ;;  %v1148_v26 = vrot.slane %v1070_v6, 5 }
  0x5b   : > { %3993 = vmatmul.mubr.msk.bf16.gmra.mxu1 %vm491_vm2, %v3640_v17  ;;  %4011 = vmatmul.mubr.msk.bf16.gmra.mxu0 %vm491_vm2, %v3665_v18  ;;  %v812_v28 = vrot.slane %v811_v19, 4  ;;  %v821_v29 = vor.u32 %v820_v20, %v816_v14  ;;  %v829_v30 = vshrl.u32 %v654_v11, 16  ;;  %v832_v31 = vshll.u32 %v654_v11, 16  ;;  %v4223_v11 = vld [vmem:[#allocation2 + $0xc] sm:$0xff]   ;;  %v1591_v20 = vld [vmem:[#allocation2 + $0x20] sm:$0x1] }
  0x5c   : > { %v1146_v35 = vsel %vm4576_vm8, %v3657_v24, %v1145_v25  ;;  %v1147_v38 = vrot.slane %v1145_v25, 4  ;;  %v838_v41 = vshll.u32 %v655_v21, 16  ;;  %v842_v37 = vshrl.u32 %v655_v21, 16  ;;  %v1592_v25 = vld [vmem:[#allocation2 + $0x24] sm:$0xf] }
  0x5d   : > { %v817_v40 = vsel %vm4584_vm9, %v812_v28, %v816_v14  ;;  %v822_v42 = vrot.slane %v821_v29, 4  ;;  %v831_v44 = vrot.slane %v829_v30, 4  ;;  %v834_v46 = vrot.slane %v832_v31, 5 }
  0x5e   : > { %v1149_v50 = vsel %vm4576_vm8, %v1147_v38, %v1148_v26  ;;  %v840_v51 = vrot.slane %v838_v41, 5  ;;  %v844_v52 = vrot.slane %v842_v37, 4  ;;  %v848_v53 = vshll.u32 %v656_v22, 16  ;;  %v1593_v26 = vld [vmem:[#allocation2 + $0x28] sm:$0xf] }
  0x5f   : > { %v827_v54 = vsel %vm4584_vm9, %v822_v42, %v826_v23  ;;  %v3666_v55 = vcombine.low %v1146_v35, %v1149_v50  ;;  %v835_v34 = vor.u32 %v834_v46, %v831_v44  ;;  %v3658_v56 = vrot.slane %v1071_v27, 9  ;;  %v1594_v42 = vld [vmem:[#allocation2 + $0x2c] sm:$0x1] }
  0x60   : > { %v3641_v58 = vcombine.low %v817_v40, %v827_v54  ;;  %v845_v59 = vor.u32 %v844_v52, %v840_v51  ;;  %v850_v60 = vrot.slane %v848_v53, 5  ;;  %v1152_v61 = vrot.slane %v1072_v33, 5  ;;  %v1595_v52 = vld [vmem:[#allocation2 + $0x30] sm:$0xf]  ;;  %v4224_v53 = vld [vmem:[#allocation2 + $0x18] sm:$0xff]  }
  0x61   : > { %4014 = vmatprep.mubr.msk.bf16.mxu0 %vm491_vm2, %v3666_v55  ;;  %v836_v63 = vrot.slane %v835_v34, 4  ;;  %v1155_v0 = vrot.slane %v1073_v48, 5  ;;  %v1611_v1 = vshrl.u32 %v1586_v32, 16  ;;  %v1614_v3 = vshll.u32 %v1586_v32, 16 }
  0x62   : > { %3996 = vmatprep.mubr.msk.bf16.mxu1 %vm491_vm2, %v3641_v58  ;;  %v846_v5 = vrot.slane %v845_v59, 4  ;;  %v1153_v6 = vsel %vm4576_vm8, %v3658_v56, %v1152_v61  ;;  %v1154_v7 = vrot.slane %v1152_v61, 4  ;;  %v1620_v8 = vshll.u32 %v1587_v57, 16  ;;  %v1596_v56 = vld [vmem:[#allocation2 + $0x34] sm:$0xf] }
  0x63   : > { %v841_v10 = vsel %vm4584_vm9, %v836_v63, %v840_v51  ;;  %v1613_v12 = vrot.slane %v1611_v1, 4  ;;  %v1616_v13 = vrot.slane %v1614_v3, 5  ;;  %v1624_v14 = vshrl.u32 %v1587_v57, 16  ;;  %v4225_v63 = vld [vmem:[#allocation2 + $0x24] sm:$0xff]   ;;  %v1597_v3 = vld [vmem:[#allocation2 + $0x38] sm:$0x1] }
  0x64   : > { %v851_v16 = vsel %vm4584_vm9, %v846_v5, %v850_v60  ;;  %v1156_v17 = vsel %vm4576_vm8, %v1154_v7, %v1155_v0  ;;  %v1622_v18 = vrot.slane %v1620_v8, 5  ;;  %v1630_v19 = vshll.u32 %v1588_v62, 16  ;;  %v1598_v8 = vld [vmem:[#allocation2 + $0x3c] sm:$0xf] }
  0x65   : > { %v3642_v21 = vcombine.low %v841_v10, %v851_v16  ;;  %v3667_v22 = vcombine.low %v1153_v6, %v1156_v17  ;;  %v1617_v23 = vor.u32 %v1616_v13, %v1613_v12  ;;  %v1626_v24 = vrot.slane %v1624_v14, 4  ;;  %v1599_v13 = vld [vmem:[#allocation2 + $0x40] sm:$0xf] }
  0x66   : > { %v1632_v27 = vrot.slane %v1630_v19, 5  ;;  %v1635_v28 = vshrl.u32 %v1589_v4, 16  ;;  %v1638_v29 = vshll.u32 %v1589_v4, 16  ;;  %v1644_v30 = vshll.u32 %v1590_v9, 16  ;;  %v421_v14 = vld [vmem:[%s4695_s10] sm:$0xf] }
  0x67   : > { %3997 = vmatmul.mubr.msk.bf16.gmra.mxu1 %vm491_vm2, %v3642_v21  ;;  %4015 = vmatmul.mubr.msk.bf16.gmra.mxu0 %vm491_vm2, %v3667_v22  ;;  %v1618_v31 = vrot.slane %v1617_v23, 4  ;;  %v1627_v33 = vor.u32 %v1626_v24, %v1622_v18  ;;  %v1648_v35 = vshrl.u32 %v1590_v9, 16  ;;  %v1654_v38 = vshll.u32 %v1591_v20, 16  ;;  %v422_v20 = vld [vmem:[%s4695_s10 + $0x4] sm:$0xf] }
  0x68   : > { %4020 = vmatprep.mubr.msk.bf16.mxu1 %vm491_vm2, %v4223_v11  ;;  %v1637_v41 = vrot.slane %v1635_v28, 4  ;;  %v1640_v37 = vrot.slane %v1638_v29, 5  ;;  %v1646_v40 = vrot.slane %v1644_v30, 5  ;;  %v1659_v44 = vshrl.u32 %v1592_v25, 16  ;;  %428 = vst.msk [vmem:[#allocation2 + $0x60] sm:$0xf] %vm395_vm1, %v421_v14 }
  0x69   : > { %v1623_v46 = vsel %vm4584_vm9, %v1618_v31, %v1622_v18  ;;  %v1628_v48 = vrot.slane %v1627_v33, 4  ;;  %v1650_v50 = vrot.slane %v1648_v35, 4  ;;  %v1656_v51 = vrot.slane %v1654_v38, 5  ;;  %v423_v21 = vld [vmem:[%s4695_s10 + $0x8] sm:$0x1] }
  0x6a   : > { %v1641_v32 = vor.u32 %v1640_v37, %v1637_v41  ;;  %v1661_v54 = vrot.slane %v1659_v44, 4  ;;  %v1662_v55 = vshll.u32 %v1592_v25, 16  ;;  %v1668_v34 = vshll.u32 %v1593_v26, 16  ;;  %429 = vst.msk [vmem:[#allocation2 + $0x64] sm:$0xf] %vm395_vm1, %v422_v20  ;;  %v4229_v20 = vld [vmem:[#allocation2 + $0x54] sm:$0xff]  }
  0x6b   : > { %v1633_v57 = vsel %vm4584_vm9, %v1628_v48, %v1632_v27  ;;  %v1651_v58 = vor.u32 %v1650_v50, %v1646_v40  ;;  %v1672_v59 = vshrl.u32 %v1593_v26, 16  ;;  %v1678_v60 = vshll.u32 %v1594_v42, 16  ;;  %430 = vst.msk [vmem:[#allocation2 + $0x68] sm:$0x1] %vm398_vm3, %v423_v21  ;;  %v4226_v27 = vld [vmem:[#allocation2 + $0x30] sm:$0xff]   ;;  %v4227_v50 = vld [vmem:[#allocation2 + $0x3c] sm:$0xff]  }
  0x6c   : > { %v3694_v61 = vcombine.low %v1623_v46, %v1633_v57  ;;  %v1642_v62 = vrot.slane %v1641_v32, 4  ;;  %v1664_v0 = vrot.slane %v1662_v55, 5  ;;  %v1670_v1 = vrot.slane %v1668_v34, 5  ;;  %v1600_v30 = vld [vmem:[#allocation2 + $0x44] sm:$0x1] }
  0x6d   : > { %v1652_v4 = vrot.slane %v1651_v58, 4  ;;  %v1674_v5 = vrot.slane %v1672_v59, 4  ;;  %v1680_v6 = vrot.slane %v1678_v60, 5  ;;  %v1683_v7 = vshrl.u32 %v1595_v52, 16  ;;  %v1601_v41 = vld [vmem:[#allocation2 + $0x48] sm:$0xf] }
  0x6e   : > { %4038 = vmatprep.mubr.msk.bf16.mxu0 %vm491_vm2, %v3694_v61  ;;  %v1647_v9 = vsel %vm4584_vm9, %v1642_v62, %v1646_v40  ;;  %v1665_v10 = vor.u32 %v1664_v0, %v1661_v54  ;;  %v1686_v11 = vshll.u32 %v1595_v52, 16  ;;  %v1692_v12 = vshll.u32 %v1596_v56, 16  ;;  %v1602_v46 = vld [vmem:[#allocation2 + $0x4c] sm:$0xf]  ;;  %v1604_v34 = vld [vmem:[#allocation2 + $0x54] sm:$0xf] }
  0x6f   : > { %4021 = vmatmul.mubr.msk.bf16.vlgmr.msra.gmra.mxu1 %vm491_vm2, %v4224_v53  ;;  %v1657_v16 = vsel %vm4584_vm9, %v1652_v4, %v1656_v51  ;;  %v1675_v17 = vor.u32 %v1674_v5, %v1670_v1  ;;  %v1685_v18 = vrot.slane %v1683_v7, 4  ;;  %v1696_v19 = vshrl.u32 %v1596_v56, 16  ;;  %v1603_v53 = vld [vmem:[#allocation2 + $0x50] sm:$0x1]  ;;  %v1605_v60 = vld [vmem:[#allocation2 + $0x58] sm:$0xf] }
  0x70   : > { %v3695_v22 = vcombine.low %v1647_v9, %v1657_v16  ;;  %4055 = vmatpush3.bf16.msra.mxu1 %v4553_v43  ;;  %4024 = vmatprep.mubr.msk.bf16.mxu1 %vm491_vm2, %v4225_v63  ;;  %v1666_v23 = vrot.slane %v1665_v10, 4  ;;  %v1688_v24 = vrot.slane %v1686_v11, 5  ;;  %v1694_v25 = vrot.slane %v1692_v12, 5  ;;  %v1606_v5 = vld [vmem:[#allocation2 + $0x5c] sm:$0x1] }
  0x71   : > { %v1676_v26 = vrot.slane %v1675_v17, 4  ;;  %v1698_v28 = vrot.slane %v1696_v19, 4  ;;  %v1702_v29 = vshll.u32 %v1597_v3, 16  ;;  %v1707_v31 = vshrl.u32 %v1598_v8, 16  ;;  %4136 = vmatprep.subr.msk.bf16.mxu1 %vm516_vm0, %v4535_v36  ;;  %v1607_v10 = vld [vmem:[#allocation2 + $0x60] sm:$0xf] }
  0x72   : > { %4039 = vmatmul.mubr.msk.bf16.vlgmr.msra.gmra.mxu0 %vm491_vm2, %v3695_v22  ;;  %v1671_v43 = vsel %vm4584_vm9, %v1666_v23, %v1670_v1  ;;  %v1689_v33 = vor.u32 %v1688_v24, %v1685_v18  ;;  %v1710_v35 = vshll.u32 %v1598_v8, 16  ;;  %v1716_v38 = vshll.u32 %v1599_v13, 16  ;;  %v4228_v17 = vld [vmem:[#allocation2 + $0x48] sm:$0xff]  }
  0x73   : > { %4073 = vmatpush3.bf16.msra.mxu0 %v4559_v45  ;;  %v1681_v37 = vsel %vm4584_vm9, %v1676_v26, %v1680_v6  ;;  %v1699_v40 = vor.u32 %v1698_v28, %v1694_v25  ;;  %v1704_v42 = vrot.slane %v1702_v29, 5  ;;  %v1709_v44 = vrot.slane %v1707_v31, 4  ;;  %v2000_v26 = vld [vmem:[#allocation2 + $0xc] sm:$0xe] }
  0x74   : > { %v3696_v48 = vcombine.low %v1671_v43, %v1681_v37  ;;  %v1690_v36 = vrot.slane %v1689_v33, 4  ;;  %v1712_v51 = vrot.slane %v1710_v35, 5  ;;  %v1718_v52 = vrot.slane %v1716_v38, 5  ;;  %4137 = vmatprep.subr.msk.bf16.mxu0 %vm516_vm0, %v4544_v39  ;;  %v2001_v37 = vld [vmem:[#allocation2 + $0x10] sm:$0xf] }
  0x75   : > { %v1700_v32 = vrot.slane %v1699_v40, 4  ;;  %v1720_v54 = vshrl.u32 %v1599_v13, 16  ;;  %v1726_v55 = vshll.u32 %v1600_v30, 16  ;;  %v1731_v45 = vshrl.u32 %v1601_v41, 16  ;;  %v1608_v30 = vld [vmem:[#allocation2 + $0x64] sm:$0xf] }
  0x76   : > { %4042 = vmatprep.mubr.msk.bf16.mxu0 %vm491_vm2, %v3696_v48  ;;  %v1695_v56 = vsel %vm4584_vm9, %v1690_v36, %v1694_v25  ;;  %v1713_v57 = vor.u32 %v1712_v51, %v1709_v44  ;;  %v1734_v58 = vshll.u32 %v1601_v41, 16  ;;  %v1740_v59 = vshll.u32 %v1602_v46, 16  ;;  %v1609_v41 = vld [vmem:[#allocation2 + $0x68] sm:$0x1]  ;;  %v2002_v48 = vld [vmem:[#allocation2 + $0x14] sm:$0x1] }
  0x77   : > { %4025 = vmatmul.mubr.msk.bf16.gmra.mxu1 %vm491_vm2, %v4226_v27  ;;  %v1705_v61 = vsel %vm4584_vm9, %v1700_v32, %v1704_v42  ;;  %v1722_v39 = vrot.slane %v1720_v54, 4  ;;  %v1728_v62 = vrot.slane %v1726_v55, 5  ;;  %v1733_v63 = vrot.slane %v1731_v45, 4  ;;  %v2003_v36 = vld [vmem:[#allocation2 + $0x18] sm:$0xe] }
  0x78   : > { %v3697_v0 = vcombine.low %v1695_v56, %v1705_v61  ;;  %4028 = vmatprep.mubr.msk.bf16.mxu1 %vm491_vm2, %v4227_v50  ;;  %v1714_v1 = vrot.slane %v1713_v57, 4  ;;  %v1736_v3 = vrot.slane %v1734_v58, 5  ;;  %v1742_v4 = vrot.slane %v1740_v59, 5  ;;  %v2004_v32 = vld [vmem:[#allocation2 + $0x1c] sm:$0xf] }
  0x79   : > { %v1723_v6 = vor.u32 %v1722_v39, %v1718_v52  ;;  %v1744_v7 = vshrl.u32 %v1602_v46, 16  ;;  %v1750_v8 = vshll.u32 %v1603_v53, 16  ;;  %v1755_v9 = vshrl.u32 %v1604_v34, 16  ;;  %v2005_v56 = vld [vmem:[#allocation2 + $0x20] sm:$0x1] }
  0x7a   : > { %4043 = vmatmul.mubr.msk.bf16.gmra.mxu0 %vm491_vm2, %v3697_v0  ;;  %v1719_v11 = vsel %vm4584_vm9, %v1714_v1, %v1718_v52  ;;  %v1737_v12 = vor.u32 %v1736_v3, %v1733_v63  ;;  %v1758_v13 = vshll.u32 %v1604_v34, 16  ;;  %v1764_v14 = vshll.u32 %v1605_v60, 16  ;;  %v2006_v61 = vld [vmem:[#allocation2 + $0x24] sm:$0xe]  ;;  %v2007_v39 = vld [vmem:[#allocation2 + $0x28] sm:$0xf] }
  0x7b   : > { %v1724_v16 = vrot.slane %v1723_v6, 4  ;;  %v1746_v18 = vrot.slane %v1744_v7, 4  ;;  %v1752_v19 = vrot.slane %v1750_v8, 5  ;;  %v1757_v21 = vrot.slane %v1755_v9, 4  ;;  %v2009_v9 = vld [vmem:[#allocation2 + $0x30] sm:$0xe] }
  0x7c   : > { %v1738_v22 = vrot.slane %v1737_v12, 4  ;;  %v1760_v23 = vrot.slane %v1758_v13, 5  ;;  %v1766_v24 = vrot.slane %v1764_v14, 5  ;;  %v1768_v25 = vshrl.u32 %v1605_v60, 16  ;;  %v2010_v14 = vld [vmem:[#allocation2 + $0x34] sm:$0xf] }
  0x7d   : > { %v1729_v27 = vsel %vm4584_vm9, %v1724_v16, %v1728_v62  ;;  %v1747_v28 = vor.u32 %v1746_v18, %v1742_v4  ;;  %v1774_v29 = vshll.u32 %v1606_v5, 16  ;;  %v1779_v31 = vshrl.u32 %v1607_v10, 16  ;;  %v4230_v62 = vld [vmem:[#allocation2 + $0x60] sm:$0xff]   ;;  %v2011_v16 = vld [vmem:[#allocation2 + $0x38] sm:$0x1] }
  0x7e   : > { %v3698_v43 = vcombine.low %v1719_v11, %v1729_v27  ;;  %v1743_v33 = vsel %vm4584_vm9, %v1738_v22, %v1742_v4  ;;  %v1761_v35 = vor.u32 %v1760_v23, %v1757_v21  ;;  %v1770_v38 = vrot.slane %v1768_v25, 4  ;;  %v2008_v4 = vld [vmem:[#allocation2 + $0x2c] sm:$0x1]  ;;  %v2012_v21 = vld [vmem:[#allocation2 + $0x3c] sm:$0xe] }
  0x7f   : > { %4029 = vmatmul.mubr.msk.bf16.gmra.mxu1 %vm491_vm2, %v4228_v17  ;;  %v1748_v40 = vrot.slane %v1747_v28, 4  ;;  %v1776_v42 = vrot.slane %v1774_v29, 5  ;;  %v1781_v44 = vrot.slane %v1779_v31, 4  ;;  %v1782_v46 = vshll.u32 %v1607_v10, 16  ;;  %v2013_v22 = vld [vmem:[#allocation2 + $0x40] sm:$0xf] }
  0x80   : > { %4046 = vmatprep.mubr.msk.bf16.mxu0 %vm491_vm2, %v3698_v43  ;;  %4032 = vmatprep.mubr.msk.bf16.mxu1 %vm491_vm2, %v4229_v20  ;;  %v1762_v50 = vrot.slane %v1761_v35, 4  ;;  %v1771_v51 = vor.u32 %v1770_v38, %v1766_v24  ;;  %v1788_v52 = vshll.u32 %v1608_v30, 16  ;;  %v1792_v53 = vshrl.u32 %v1608_v30, 16  ;;  %v2014_v23 = vld [vmem:[#allocation2 + $0x44] sm:$0x1] }
  0x81   : > { %v1753_v54 = vsel %vm4584_vm9, %v1748_v40, %v1752_v19  ;;  %v1784_v55 = vrot.slane %v1782_v46, 5  ;;  %v1798_v45 = vshll.u32 %v1609_v41, 16  ;;  %v3710_v34 = vrot.slane %v2000_v26, 9  ;;  %v4231_v26 = vld [vmem:[#allocation2 + $0x18] sm:$0xff]   ;;  %v2015_v29 = vld [vmem:[#allocation2 + $0x48] sm:$0xe] }
  0x82   : > { %v3699_v57 = vcombine.low %v1743_v33, %v1753_v54  ;;  %v1767_v58 = vsel %vm4584_vm9, %v1762_v50, %v1766_v24  ;;  %v1772_v59 = vrot.slane %v1771_v51, 4  ;;  %v1790_v60 = vrot.slane %v1788_v52, 5  ;;  %v2016_v35 = vld [vmem:[#allocation2 + $0x4c] sm:$0xf]  ;;  %v2017_v40 = vld [vmem:[#allocation2 + $0x50] sm:$0x1] }
  0x83   : > { %v1785_v63 = vor.u32 %v1784_v55, %v1781_v44  ;;  %v1794_v0 = vrot.slane %v1792_v53, 4  ;;  %v1800_v1 = vrot.slane %v1798_v45, 5  ;;  %v2050_v3 = vrot.slane %v2001_v37, 5  ;;  %v2019_v50 = vld [vmem:[#allocation2 + $0x58] sm:$0xf] }
  0x84   : > { %4047 = vmatmul.mubr.msk.bf16.gmra.mxu0 %vm491_vm2, %v3699_v57  ;;  %v1777_v5 = vsel %vm4584_vm9, %v1772_v59, %v1776_v42  ;;  %v2053_v6 = vrot.slane %v2002_v48, 5  ;;  %v3711_v7 = vrot.slane %v2003_v36, 9  ;;  %v2057_v8 = vrot.slane %v2004_v32, 5  ;;  %v2018_v42 = vld [vmem:[#allocation2 + $0x54] sm:$0xe] }
  0x85   : > { %v3700_v10 = vcombine.low %v1767_v58, %v1777_v5  ;;  %v1786_v11 = vrot.slane %v1785_v63, 4  ;;  %v1795_v12 = vor.u32 %v1794_v0, %v1790_v60  ;;  %v2051_v13 = vsel %vm4576_vm8, %v3710_v34, %v2050_v3  ;;  %v2020_v51 = vld [vmem:[#allocation2 + $0x5c] sm:$0x1] }
  0x86   : > { %v2052_v17 = vrot.slane %v2050_v3, 4  ;;  %v2058_v18 = vsel %vm4576_vm8, %v3711_v7, %v2057_v8  ;;  %v2059_v19 = vrot.slane %v2057_v8, 4  ;;  %v2060_v20 = vrot.slane %v2005_v56, 5  ;;  %v425_v3 = vld [vmem:[%s4695_s10 + $0x10] sm:$0xf] }
  0x87   : > { %4050 = vmatprep.mubr.msk.bf16.mxu0 %vm491_vm2, %v3700_v10  ;;  %4033 = vmatmul.mubr.msk.bf16.gmra.mxu1 %vm491_vm2, %v4230_v62  ;;  %v1791_v24 = vsel %vm4584_vm9, %v1786_v11, %v1790_v60  ;;  %v1796_v25 = vrot.slane %v1795_v12, 4  ;;  %v3712_v27 = vrot.slane %v2006_v61, 9  ;;  %v2064_v28 = vrot.slane %v2007_v39, 5  ;;  %v2021_v61 = vld [vmem:[#allocation2 + $0x60] sm:$0xe] }
  0x88   : > { %v2054_v30 = vsel %vm4576_vm8, %v2052_v17, %v2053_v6  ;;  %v2061_v31 = vsel %vm4576_vm8, %v2059_v19, %v2060_v20  ;;  %v2067_v43 = vrot.slane %v2008_v4, 5  ;;  %v3713_v33 = vrot.slane %v2009_v9, 9  ;;  %v2022_v39 = vld [vmem:[#allocation2 + $0x64] sm:$0xf]  ;;  %v2023_v7 = vld [vmem:[#allocation2 + $0x68] sm:$0x1] }
  0x89   : > { %v1801_v38 = vsel %vm4584_vm9, %v1796_v25, %v1800_v1  ;;  %v3719_v41 = vcombine.low %v2051_v13, %v2054_v30  ;;  %v2065_v37 = vsel %vm4576_vm8, %v3712_v27, %v2064_v28  ;;  %v2066_v46 = vrot.slane %v2064_v28, 4  ;;  %v424_v1 = vld [vmem:[%s4695_s10 + $0xc] sm:$0xf]  ;;  %432 = vst.msk [vmem:[#allocation2 + $0x70] sm:$0xf] %vm395_vm1, %v425_v3  ;;  %v4232_v9 = vld [vmem:[#allocation2 + $0x24] sm:$0xff]  }
  0x8a   : > { %v3701_v44 = vcombine.low %v1791_v24, %v1801_v38  ;;  %v2071_v48 = vrot.slane %v2010_v14, 5  ;;  %v2074_v36 = vrot.slane %v2011_v16, 5  ;;  %v3720_v52 = vcombine.low %v2058_v18, %v2061_v31  ;;  %431 = vst.msk [vmem:[#allocation2 + $0x6c] sm:$0xf] %vm395_vm1, %v424_v1  ;;  %v2533_v8 = vld [vmem:[#allocation2 + $0x18] sm:$0xf] }
  0x8b   : > { %4056 = vmatprep.mubr.msk.bf16.mxu1 %vm491_vm2, %v3719_v41  ;;  %v3714_v53 = vrot.slane %v2012_v21, 9  ;;  %v2078_v32 = vrot.slane %v2013_v22, 5  ;;  %v2081_v54 = vrot.slane %v2014_v23, 5  ;;  %v2068_v55 = vsel %vm4576_vm8, %v2066_v46, %v2067_v43  ;;  %v2534_v14 = vld [vmem:[#allocation2 + $0x1c] sm:$0xf]  ;;  %v4233_v17 = vld [vmem:[#allocation2 + $0x30] sm:$0xff]  }
  0x8c   : > { %4051 = vmatmul.mubr.msk.bf16.gmra.mxu0 %vm491_vm2, %v3701_v44  ;;  %v2073_v45 = vrot.slane %v2071_v48, 4  ;;  %v3715_v34 = vrot.slane %v2015_v29, 9  ;;  %v2085_v56 = vrot.slane %v2016_v35, 5  ;;  %v3721_v57 = vcombine.low %v2065_v37, %v2068_v55  ;;  %v2535_v16 = vld [vmem:[#allocation2 + $0x20] sm:$0x1] }
  0x8d   : > { %4074 = vmatprep.mubr.msk.bf16.mxu0 %vm491_vm2, %v4231_v26  ;;  %v2072_v58 = vsel %vm4576_vm8, %v3713_v33, %v2071_v48  ;;  %v2080_v59 = vrot.slane %v2078_v32, 4  ;;  %v2088_v60 = vrot.slane %v2017_v40, 5  ;;  %v3716_v0 = vrot.slane %v2018_v42, 9  ;;  %v2947_v25 = vld [vmem:[#allocation2 + $0x18] sm:$0xe] }
  0x8e   : > { %v2075_v62 = vsel %vm4576_vm8, %v2073_v45, %v2074_v36  ;;  %v2087_v63 = vrot.slane %v2085_v56, 4  ;;  %v2079_v4 = vsel %vm4576_vm8, %v3714_v53, %v2078_v32  ;;  %v2092_v5 = vrot.slane %v2019_v50, 5  ;;  %v2948_v30 = vld [vmem:[#allocation2 + $0x1c] sm:$0xf]  ;;  %v2949_v38 = vld [vmem:[#allocation2 + $0x20] sm:$0x1] }
  0x8f   : > { %4057 = vmatmul.mubr.msk.bf16.vlgmr.msra.gmra.mxu1 %vm491_vm2, %v3720_v52  ;;  %v2095_v6 = vrot.slane %v2020_v51, 5  ;;  %v3722_v10 = vcombine.low %v2072_v58, %v2075_v62  ;;  %v2082_v11 = vsel %vm4576_vm8, %v2080_v59, %v2081_v54  ;;  %v4783_v12 = vsel %vm4576_vm8, %v3715_v34, %v2085_v56  ;;  %v2536_v41 = vld [vmem:[#allocation2 + $0x24] sm:$0xf]  ;;  %v2537_v46 = vld [vmem:[#allocation2 + $0x28] sm:$0xf]  ;;  %v4234_v52 = vld [vmem:[#allocation2 + $0x3c] sm:$0xff]  }
  0x90   : > { %4091 = vmatpush3.bf16.msra.mxu1 %v4565_v47  ;;  %4060 = vmatprep.mubr.msk.bf16.mxu1 %vm491_vm2, %v3721_v57  ;;  %v2099_v13 = vrot.slane %v2022_v39, 5  ;;  %v4787_v18 = vsel %vm4576_vm8, %v2087_v63, %v2088_v60  ;;  %v4791_v47 = vsel %vm4576_vm8, %v3716_v0, %v2092_v5  ;;  %v2094_v19 = vrot.slane %v2092_v5, 4  ;;  %v2950_v45 = vld [vmem:[#allocation2 + $0x24] sm:$0xe]  ;;  %v2951_v59 = vld [vmem:[#allocation2 + $0x28] sm:$0xf] }
  0x91   : > { %v3717_v20 = vrot.slane %v2021_v61, 9  ;;  %v2102_v22 = vrot.slane %v2023_v7, 5  ;;  %v2558_v23 = vshrl.u32 %v2533_v8, 16  ;;  %v2561_v24 = vshll.u32 %v2533_v8, 16  ;;  %v4235_v60 = vld [vmem:[#allocation2 + $0x48] sm:$0xff]  }
  0x92   : > { %v2101_v21 = vrot.slane %v2099_v13, 4  ;;  %v4795_v26 = vsel %vm4576_vm8, %v2094_v19, %v2095_v6  ;;  %v2567_v27 = vshll.u32 %v2534_v14, 16  ;;  %v2571_v28 = vshrl.u32 %v2534_v14, 16  ;;  %v2952_v0 = vld [vmem:[#allocation2 + $0x2c] sm:$0x1] }
  0x93   : > { %v2577_v29 = vshll.u32 %v2535_v16, 16  ;;  %v3723_v31 = vcombine.low %v2079_v4, %v2082_v11  ;;  %v3724_v43 = vcombine.low %v4783_v12, %v4787_v18  ;;  %v2560_v33 = vrot.slane %v2558_v23, 4  ;;  %v2539_v6 = vld [vmem:[#allocation2 + $0x30] sm:$0xf]  ;;  %v2540_v11 = vld [vmem:[#allocation2 + $0x34] sm:$0xf] }
  0x94   : > { %4075 = vmatmul.mubr.msk.bf16.vlgmr.msra.gmra.mxu0 %vm491_vm2, %v4232_v9  ;;  %v2563_v35 = vrot.slane %v2561_v24, 5  ;;  %v3725_v37 = vcombine.low %v4791_v47, %v4795_v26  ;;  %v4806_v40 = vsel %vm4576_vm8, %v3717_v20, %v2099_v13  ;;  %v2569_v42 = vrot.slane %v2567_v27, 5  ;;  %v2541_v19 = vld [vmem:[#allocation2 + $0x38] sm:$0x1] }
  0x95   : > { %4109 = vmatpush3.bf16.msra.mxu0 %v4571_v49  ;;  %4078 = vmatprep.mubr.msk.bf16.mxu0 %vm491_vm2, %v4233_v17  ;;  %v2573_v44 = vrot.slane %v2571_v28, 4  ;;  %v4810_v48 = vsel %vm4576_vm8, %v2101_v21, %v2102_v22  ;;  %v2579_v50 = vrot.slane %v2577_v29, 5  ;;  %v3769_v51 = vrot.slane %v2947_v25, 9  ;;  %v2538_v49 = vld [vmem:[#allocation2 + $0x2c] sm:$0x1]  ;;  %v4236_v26 = vld [vmem:[#allocation2 + $0x54] sm:$0xff]  }
  0x96   : > { %v2564_v36 = vor.u32 %v2563_v35, %v2560_v33  ;;  %v2997_v32 = vrot.slane %v2948_v30, 5  ;;  %v3000_v54 = vrot.slane %v2949_v38, 5  ;;  %v2582_v55 = vshrl.u32 %v2536_v41, 16  ;;  %v2953_v25 = vld [vmem:[#allocation2 + $0x30] sm:$0xe] }
  0x97   : > { %4061 = vmatmul.mubr.msk.bf16.gmra.mxu1 %vm491_vm2, %v3722_v10  ;;  %v2574_v53 = vor.u32 %v2573_v44, %v2569_v42  ;;  %v2585_v56 = vshll.u32 %v2536_v41, 16  ;;  %v2591_v57 = vshll.u32 %v2537_v46, 16  ;;  %v2595_v58 = vshrl.u32 %v2537_v46, 16  ;;  %v4237_v44 = vld [vmem:[#allocation2 + $0x60] sm:$0xff]  }
  0x98   : > { %4064 = vmatprep.mubr.msk.bf16.mxu1 %vm491_vm2, %v3723_v31  ;;  %v2565_v34 = vrot.slane %v2564_v36, 4  ;;  %v3726_v61 = vcombine.low %v4806_v40, %v4810_v48  ;;  %v2999_v62 = vrot.slane %v2997_v32, 4  ;;  %v2584_v63 = vrot.slane %v2582_v55, 4  ;;  %v2954_v31 = vld [vmem:[#allocation2 + $0x34] sm:$0xf] }
  0x99   : > { %v2575_v39 = vrot.slane %v2574_v53, 4  ;;  %v2587_v3 = vrot.slane %v2585_v56, 5  ;;  %v2593_v4 = vrot.slane %v2591_v57, 5  ;;  %v2597_v5 = vrot.slane %v2595_v58, 4 }
  0x9a   : > { %v2570_v1 = vsel %vm4584_vm9, %v2565_v34, %v2569_v42  ;;  %v4822_v8 = vsel %vm4576_vm8, %v3769_v51, %v2997_v32  ;;  %v4826_v9 = vsel %vm4576_vm8, %v2999_v62, %v3000_v54  ;;  %v2601_v10 = vshll.u32 %v2538_v49, 16  ;;  %v2955_v42 = vld [vmem:[#allocation2 + $0x38] sm:$0x1]  ;;  %v2543_v32 = vld [vmem:[#allocation2 + $0x40] sm:$0xf] }
  0x9b   : > { %v2580_v7 = vsel %vm4584_vm9, %v2575_v39, %v2579_v50  ;;  %v2588_v13 = vor.u32 %v2587_v3, %v2584_v63  ;;  %v2598_v14 = vor.u32 %v2597_v5, %v2593_v4  ;;  %v3770_v16 = vrot.slane %v2950_v45, 9  ;;  %v2544_v34 = vld [vmem:[#allocation2 + $0x44] sm:$0x1]  ;;  %v2956_v39 = vld [vmem:[#allocation2 + $0x3c] sm:$0xe] }
  0x9c   : > { %4079 = vmatmul.mubr.msk.bf16.gmra.mxu0 %vm491_vm2, %v4234_v52  ;;  %v4829_v12 = vcombine.low %v2570_v1, %v2580_v7  ;;  %v2603_v17 = vrot.slane %v2601_v10, 5  ;;  %v3004_v18 = vrot.slane %v2951_v59, 5  ;;  %v3007_v47 = vrot.slane %v2952_v0, 5  ;;  %v2957_v3 = vld [vmem:[#allocation2 + $0x40] sm:$0xf] }
  0x9d   : > { %4082 = vmatprep.mubr.msk.bf16.mxu0 %vm491_vm2, %v4235_v60  ;;  %v2606_v20 = vshrl.u32 %v2539_v6, 16  ;;  %v2589_v21 = vrot.slane %v2588_v13, 4  ;;  %v2599_v22 = vrot.slane %v2598_v14, 4  ;;  %v2609_v23 = vshll.u32 %v2539_v6, 16  ;;  %v2958_v10 = vld [vmem:[#allocation2 + $0x44] sm:$0x1] }
  0x9e   : > { %v2615_v24 = vshll.u32 %v2540_v11, 16  ;;  %v3778_v27 = vcombine.low %v4822_v8, %v4826_v9  ;;  %v3006_v28 = vrot.slane %v3004_v18, 4  ;;  %v2619_v30 = vshrl.u32 %v2540_v11, 16  ;;  %v2545_v11 = vld [vmem:[#allocation2 + $0x48] sm:$0xf] }
  0x9f   : > { %4065 = vmatmul.mubr.msk.bf16.gmra.mxu1 %vm491_vm2, %v3724_v43  ;;  %v2608_v29 = vrot.slane %v2606_v20, 4  ;;  %v2594_v33 = vsel %vm4584_vm9, %v2589_v21, %v2593_v4  ;;  %v2604_v35 = vsel %vm4584_vm9, %v2599_v22, %v2603_v17  ;;  %v2611_v38 = vrot.slane %v2609_v23, 5  ;;  %v2542_v43 = vld [vmem:[#allocation2 + $0x3c] sm:$0xf] }
  0xa0   : > { %4068 = vmatprep.mubr.msk.bf16.mxu1 %vm491_vm2, %v3725_v37  ;;  %v2617_v41 = vrot.slane %v2615_v24, 5  ;;  %v4840_v46 = vcombine.low %v2594_v33, %v2604_v35  ;;  %v4844_v36 = vsel %vm4576_vm8, %v3770_v16, %v3004_v18  ;;  %v2621_v50 = vrot.slane %v2619_v30, 4  ;;  %v2546_v18 = vld [vmem:[#allocation2 + $0x4c] sm:$0xf] }
  0xa1   : > { %v2625_v51 = vshll.u32 %v2541_v19, 16  ;;  %v4848_v37 = vsel %vm4576_vm8, %v3006_v28, %v3007_v47  ;;  %v2612_v49 = vor.u32 %v2611_v38, %v2608_v29  ;;  %v3771_v52 = vrot.slane %v2953_v25, 9  ;;  %v4238_v47 = vld [vmem:[#allocation2 + $0x6c] sm:$0xff]   ;;  %v2959_v25 = vld [vmem:[#allocation2 + $0x48] sm:$0xe] }
  0xa2   : > { %v3011_v53 = vrot.slane %v2954_v31, 5  ;;  %v2622_v54 = vor.u32 %v2621_v50, %v2617_v41  ;;  %v3014_v45 = vrot.slane %v2955_v42, 5  ;;  %v2630_v56 = vshrl.u32 %v2542_v43, 16  ;;  %v2960_v31 = vld [vmem:[#allocation2 + $0x4c] sm:$0xf] }
  0xa3   : > { %v2627_v55 = vrot.slane %v2625_v51, 5  ;;  %v2613_v57 = vrot.slane %v2612_v49, 4  ;;  %v2633_v60 = vshll.u32 %v2542_v43, 16  ;;  %v2639_v0 = vshll.u32 %v2543_v32, 16  ;;  %v2548_v51 = vld [vmem:[#allocation2 + $0x54] sm:$0xf] }
  0xa4   : > { %4083 = vmatmul.mubr.msk.bf16.gmra.mxu0 %vm491_vm2, %v4236_v26  ;;  %v4853_v58 = vsel %vm4576_vm8, %v3771_v52, %v3011_v53  ;;  %v3013_v59 = vrot.slane %v3011_v53, 4  ;;  %v2623_v62 = vrot.slane %v2622_v54, 4  ;;  %v2632_v63 = vrot.slane %v2630_v56, 4  ;;  %v2549_v54 = vld [vmem:[#allocation2 + $0x58] sm:$0xf] }
  0xa5   : > { %4086 = vmatprep.mubr.msk.bf16.mxu0 %vm491_vm2, %v4237_v44  ;;  %v2643_v1 = vshrl.u32 %v2543_v32, 16  ;;  %v3779_v4 = vcombine.low %v4844_v36, %v4848_v37  ;;  %v2635_v6 = vrot.slane %v2633_v60, 5  ;;  %v2649_v7 = vshll.u32 %v2544_v34, 16 }
  0xa6   : > { %v4860_v5 = vsel %vm4576_vm8, %v3013_v59, %v3014_v45  ;;  %v2618_v13 = vsel %vm4584_vm9, %v2613_v57, %v2617_v41  ;;  %v2628_v14 = vsel %vm4584_vm9, %v2623_v62, %v2627_v55  ;;  %v2641_v16 = vrot.slane %v2639_v0, 5  ;;  %v2961_v41 = vld [vmem:[#allocation2 + $0x50] sm:$0x1]  ;;  %v426_v55 = vld [vmem:[%s4695_s10 + $0x14] sm:$0x1] }
  0xa7   : > { %4069 = vmatmul.mubr.msk.bf16.gmra.mxu1 %vm491_vm2, %v3726_v61  ;;  %v2645_v17 = vrot.slane %v2643_v1, 4  ;;  %v3780_v19 = vcombine.low %v4853_v58, %v4860_v5  ;;  %v2636_v20 = vor.u32 %v2635_v6, %v2632_v63  ;;  %v2651_v40 = vrot.slane %v2649_v7, 5  ;;  %v2547_v61 = vld [vmem:[#allocation2 + $0x50] sm:$0x1]  ;;  %433 = vst.msk [vmem:[#allocation2 + $0x74] sm:$0x1] %vm398_vm3, %v426_v55 }
  0xa8   : > { %4092 = vmatprep.mubr.msk.bf16.mxu1 %vm491_vm2, %v4829_v12  ;;  %v3772_v48 = vrot.slane %v2956_v39, 9  ;;  %v3018_v22 = vrot.slane %v2957_v3, 5  ;;  %v3021_v23 = vrot.slane %v2958_v10, 5  ;;  %v2654_v24 = vshrl.u32 %v2545_v11, 16  ;;  %v2550_v59 = vld [vmem:[#allocation2 + $0x5c] sm:$0x1] }
  0xa9   : > { %v2646_v21 = vor.u32 %v2645_v17, %v2641_v16  ;;  %v2637_v26 = vrot.slane %v2636_v20, 4  ;;  %v2657_v28 = vshll.u32 %v2545_v11, 16  ;;  %v2663_v29 = vshll.u32 %v2546_v18, 16  ;;  %v2962_v1 = vld [vmem:[#allocation2 + $0x54] sm:$0xe] }
  0xaa   : > { %v2667_v30 = vshrl.u32 %v2546_v18, 16  ;;  %v3755_v33 = vcombine.low %v2618_v13, %v2628_v14  ;;  %v3020_v12 = vrot.slane %v3018_v22, 4  ;;  %v2656_v38 = vrot.slane %v2654_v24, 4  ;;  %v2963_v11 = vld [vmem:[#allocation2 + $0x58] sm:$0xf] }
  0xab   : > { %v2647_v35 = vrot.slane %v2646_v21, 4  ;;  %v2642_v42 = vsel %vm4584_vm9, %v2637_v26, %v2641_v16  ;;  %v2659_v43 = vrot.slane %v2657_v28, 5  ;;  %v2665_v44 = vrot.slane %v2663_v29, 5  ;;  %v2964_v17 = vld [vmem:[#allocation2 + $0x5c] sm:$0x1] }
  0xac   : > { %4087 = vmatmul.mubr.msk.bf16.gmra.mxu0 %vm491_vm2, %v4238_v47  ;;  %v2669_v50 = vrot.slane %v2667_v30, 4  ;;  %v4885_v52 = vsel %vm4576_vm8, %v3772_v48, %v3018_v22  ;;  %v4889_v53 = vsel %vm4576_vm8, %v3020_v12, %v3021_v23  ;;  %v2673_v32 = vshll.u32 %v2547_v61, 16  ;;  %v2551_v18 = vld [vmem:[#allocation2 + $0x60] sm:$0xf]  ;;  %v2552_v24 = vld [vmem:[#allocation2 + $0x64] sm:$0xf] }
  0xad   : > { %4110 = vmatprep.mubr.msk.bf16.mxu0 %vm491_vm2, %v3778_v27  ;;  %v2652_v49 = vsel %vm4584_vm9, %v2647_v35, %v2651_v40  ;;  %v2660_v34 = vor.u32 %v2659_v43, %v2656_v38  ;;  %v3773_v8 = vrot.slane %v2959_v25, 9  ;;  %v3025_v27 = vrot.slane %v2960_v31, 5  ;;  %v2553_v29 = vld [vmem:[#allocation2 + $0x68] sm:$0x1] }
  0xae   : > { %v3756_v45 = vcombine.low %v2642_v42, %v2652_v49  ;;  %v2670_v56 = vor.u32 %v2669_v50, %v2665_v44  ;;  %v2675_v9 = vrot.slane %v2673_v32, 5  ;;  %v3028_v57 = vrot.slane %v2961_v41, 5  ;;  %v2966_v42 = vld [vmem:[#allocation2 + $0x64] sm:$0xf]  ;;  %v2554_v50 = vld [vmem:[#allocation2 + $0x6c] sm:$0xf] }
  0xaf   : > { %4093 = vmatmul.mubr.msk.bf16.vlgmr.msra.gmra.mxu1 %vm491_vm2, %v4840_v46  ;;  %v2678_v60 = vshrl.u32 %v2548_v51, 16  ;;  %v2661_v39 = vrot.slane %v2660_v34, 4  ;;  %v2681_v63 = vshll.u32 %v2548_v51, 16  ;;  %v2687_v0 = vshll.u32 %v2549_v54, 16  ;;  %v2555_v32 = vld [vmem:[#allocation2 + $0x70] sm:$0xf] }
  0xb0   : > { %4096 = vmatprep.mubr.msk.bf16.mxu1 %vm491_vm2, %v3755_v33  ;;  %v2671_v62 = vrot.slane %v2670_v56, 4  ;;  %v3781_v3 = vcombine.low %v4885_v52, %v4889_v53  ;;  %v3027_v6 = vrot.slane %v3025_v27, 4  ;;  %v2691_v10 = vshrl.u32 %v2549_v54, 16 }
  0xb1   : > { %v2680_v7 = vrot.slane %v2678_v60, 4  ;;  %v2666_v46 = vsel %vm4584_vm9, %v2661_v39, %v2665_v44  ;;  %v2683_v14 = vrot.slane %v2681_v63, 5  ;;  %v2689_v16 = vrot.slane %v2687_v0, 5  ;;  %v2967_v44 = vld [vmem:[#allocation2 + $0x68] sm:$0x1] }
  0xb2   : > { %v2676_v13 = vsel %vm4584_vm9, %v2671_v62, %v2675_v9  ;;  %v3026_v47 = vsel %vm4576_vm8, %v3773_v8, %v3025_v27  ;;  %v3029_v20 = vsel %vm4576_vm8, %v3027_v6, %v3028_v57  ;;  %v2693_v40 = vrot.slane %v2691_v10, 4  ;;  %v2968_v57 = vld [vmem:[#allocation2 + $0x6c] sm:$0xe]  ;;  %v2556_v60 = vld [vmem:[#allocation2 + $0x74] sm:$0x1] }
  0xb3   : > { %v2697_v48 = vshll.u32 %v2550_v59, 16  ;;  %v3757_v61 = vcombine.low %v2666_v46, %v2676_v13  ;;  %v2684_v21 = vor.u32 %v2683_v14, %v2680_v7  ;;  %v3774_v22 = vrot.slane %v2962_v1, 9  ;;  %v2969_v10 = vld [vmem:[#allocation2 + $0x70] sm:$0xf]  ;;  %v2970_v14 = vld [vmem:[#allocation2 + $0x74] sm:$0x1] }
  0xb4   : > { %4111 = vmatmul.mubr.msk.bf16.vlgmr.msra.gmra.mxu0 %vm491_vm2, %v3779_v4  ;;  %v3032_v23 = vrot.slane %v2963_v11, 5  ;;  %v2694_v25 = vor.u32 %v2693_v40, %v2689_v16  ;;  %v3035_v28 = vrot.slane %v2964_v17, 5  ;;  %v2702_v30 = vshrl.u32 %v2551_v18, 16  ;;  %v2965_v4 = vld [vmem:[#allocation2 + $0x60] sm:$0xe] }
  0xb5   : > { %4114 = vmatprep.mubr.msk.bf16.mxu0 %vm491_vm2, %v3780_v19  ;;  %v2699_v26 = vrot.slane %v2697_v48, 5  ;;  %v3782_v31 = vcombine.low %v3026_v47, %v3029_v20  ;;  %v2685_v33 = vrot.slane %v2684_v21, 4  ;;  %v2705_v37 = vshll.u32 %v2551_v18, 16 }
  0xb6   : > { %v3034_v36 = vrot.slane %v3032_v23, 4  ;;  %v2695_v35 = vrot.slane %v2694_v25, 4  ;;  %v2704_v12 = vrot.slane %v2702_v30, 4  ;;  %v2711_v38 = vshll.u32 %v2552_v24, 16 }
  0xb7   : > { %4097 = vmatmul.mubr.msk.bf16.gmra.mxu1 %vm491_vm2, %v3756_v45  ;;  %v2715_v41 = vshrl.u32 %v2552_v24, 16  ;;  %v2690_v58 = vsel %vm4584_vm9, %v2685_v33, %v2689_v16  ;;  %v3033_v5 = vsel %vm4576_vm8, %v3774_v22, %v3032_v23  ;;  %v2707_v19 = vrot.slane %v2705_v37, 5 }
  0xb8   : > { %4100 = vmatprep.mubr.msk.bf16.mxu1 %vm491_vm2, %v3757_v61  ;;  %v2721_v43 = vshll.u32 %v2553_v29, 16  ;;  %v2700_v51 = vsel %vm4584_vm9, %v2695_v35, %v2699_v26  ;;  %v3036_v49 = vsel %vm4576_vm8, %v3034_v36, %v3035_v28  ;;  %v2713_v52 = vrot.slane %v2711_v38, 5 }
  0xb9   : > { %v2717_v53 = vrot.slane %v2715_v41, 4  ;;  %v3758_v54 = vcombine.low %v2690_v58, %v2700_v51  ;;  %v2708_v55 = vor.u32 %v2707_v19, %v2704_v12  ;;  %v3775_v34 = vrot.slane %v2965_v4, 9 }
  0xba   : > { %v2723_v45 = vrot.slane %v2721_v43, 5  ;;  %v3039_v8 = vrot.slane %v2966_v42, 5  ;;  %v3042_v9 = vrot.slane %v2967_v44, 5  ;;  %v2726_v27 = vshrl.u32 %v2554_v50, 16 }
  0xbb   : > { %v2718_v56 = vor.u32 %v2717_v53, %v2713_v52  ;;  %v2709_v59 = vrot.slane %v2708_v55, 4  ;;  %v2729_v39 = vshll.u32 %v2554_v50, 16  ;;  %v2735_v62 = vshll.u32 %v2555_v32, 16 }
  0xbc   : > { %4115 = vmatmul.mubr.msk.bf16.gmra.mxu0 %vm491_vm2, %v3781_v3  ;;  %v2739_v63 = vshrl.u32 %v2555_v32, 16  ;;  %v3040_v1 = vsel %vm4576_vm8, %v3775_v34, %v3039_v8  ;;  %v3041_v6 = vrot.slane %v3039_v8, 4  ;;  %v2728_v7 = vrot.slane %v2726_v27, 4 }
  0xbd   : > { %4118 = vmatprep.mubr.msk.bf16.mxu0 %vm491_vm2, %v3782_v31  ;;  %v2719_v0 = vrot.slane %v2718_v56, 4  ;;  %v2714_v11 = vsel %vm4584_vm9, %v2709_v59, %v2713_v52  ;;  %v2731_v46 = vrot.slane %v2729_v39, 5  ;;  %v2737_v13 = vrot.slane %v2735_v62, 5 }
  0xbe   : > { %v2741_v3 = vrot.slane %v2739_v63, 4  ;;  %v3783_v16 = vcombine.low %v3033_v5, %v3036_v49  ;;  %v3043_v18 = vsel %vm4576_vm8, %v3041_v6, %v3042_v9  ;;  %v2745_v47 = vshll.u32 %v2556_v60, 16 }
  0xbf   : > { %4101 = vmatmul.mubr.msk.bf16.gmra.mxu1 %vm491_vm2, %v3758_v54  ;;  %v2724_v17 = vsel %vm4584_vm9, %v2719_v0, %v2723_v45  ;;  %v2732_v40 = vor.u32 %v2731_v46, %v2728_v7  ;;  %v3776_v61 = vrot.slane %v2968_v57, 9  ;;  %v3784_v21 = vcombine.low %v3040_v1, %v3043_v18 }
  0xc0   : > { %v3759_v20 = vcombine.low %v2714_v11, %v2724_v17  ;;  %v2742_v48 = vor.u32 %v2741_v3, %v2737_v13  ;;  %v2747_v22 = vrot.slane %v2745_v47, 5  ;;  %v3046_v23 = vrot.slane %v2969_v10, 5 }
  0xc1   : > { %v3049_v24 = vrot.slane %v2970_v14, 5  ;;  %v2733_v25 = vrot.slane %v2732_v40, 4 }
  0xc2   : > { %4104 = vmatprep.mubr.msk.bf16.mxu1 %vm491_vm2, %v3759_v20  ;;  %v2743_v26 = vrot.slane %v2742_v48, 4  ;;  %v3048_v28 = vrot.slane %v3046_v23, 4  ;;  %v3047_v33 = vsel %vm4576_vm8, %v3776_v61, %v3046_v23 }
  0xc3   : > { %v2738_v29 = vsel %vm4584_vm9, %v2733_v25, %v2737_v13 }
  0xc4   : > { %4119 = vmatmul.mubr.msk.bf16.gmra.mxu0 %vm491_vm2, %v3783_v16  ;;  %v2748_v30 = vsel %vm4584_vm9, %v2743_v26, %v2747_v22  ;;  %v3050_v36 = vsel %vm4576_vm8, %v3048_v28, %v3049_v24 }
  0xc5   : > { %4122 = vmatprep.mubr.msk.bf16.mxu0 %vm491_vm2, %v3784_v21  ;;  %v3760_v31 = vcombine.low %v2738_v29, %v2748_v30  ;;  %v3785_v37 = vcombine.low %v3047_v33, %v3050_v36 }
  0xc7   : > { %4105 = vmatmul.mubr.msk.bf16.gmra.mxu1 %vm491_vm2, %v3760_v31 }
  0xcc   : > { %4123 = vmatmul.mubr.msk.bf16.gmra.mxu0 %vm491_vm2, %v3785_v37 }
  0xf1   : > { %v3968_v4 = vpop.f32.mrf.mxu0  ;;  %v3976_v35 = vpop.f32.mrf.mxu1 }
  0xf3   : > { %v554_v12 = vpop.f32.mrf.mxu0  ;;  %v586_v38 = vpop.f32.mrf.mxu1 }
  0xf5   : > { %v3969_v15 = vpop.f32.mrf.mxu0  ;;  %v3977_v41 = vpop.f32.mrf.mxu1 }
  0xf7   : > { %v557_v42 = vpop.f32.mrf.mxu0  ;;  %v589_v58 = vpop.f32.mrf.mxu1 }
  0xf9   : > { %v3972_v5 = vpop.f32.mrf.mxu0  ;;  %v3980_v19 = vpop.f32.mrf.mxu1 }
  0xfb   : > { %v570_v43 = vpop.f32.mrf.mxu0  ;;  %v602_v44 = vpop.f32.mrf.mxu1 }
  0xfd   : > { %v3973_v50 = vpop.f32.mrf.mxu0  ;;  %v3981_v2 = vpop.f32.mrf.mxu1 }
  0xff   : > { %v573_v51 = vpop.f32.mrf.mxu0  ;;  %v605_v49 = vpop.f32.mrf.mxu1 }
 0x103   : > { %v3986_v52 = vpop.f32.mrf.mxu1  ;;  %v4004_v53 = vpop.f32.mrf.mxu0 }
 0x104   : > { %v1020_v32 = vadd.f32 %v3986_v52, %v3968_v4 }
 0x105   : > { %v939_v54 = vpop.f32.mrf.mxu1  ;;  %v1244_v55 = vpop.f32.mrf.mxu0 }
 0x106   : > { %v4948_v45 = vadd.f32 %v4004_v53, %v1020_v32  ;;  %v1018_v34 = vadd.f32 %v939_v54, %v554_v12 }
 0x107   : > { %v3987_v56 = vpop.f32.mrf.mxu1  ;;  %v4005_v8 = vpop.f32.mrf.mxu0 }
 0x108   : > { %v4950_v9 = vadd.f32 %v1244_v55, %v1018_v34  ;;  %v1021_v27 = vadd.f32 %v3987_v56, %v3969_v15 }
 0x109   : > { %v942_v57 = vpop.f32.mrf.mxu1  ;;  %v1247_v39 = vpop.f32.mrf.mxu0 }
 0x10a   : > { %v4952_v59 = vadd.f32 %v4005_v8, %v1021_v27  ;;  %v1019_v60 = vadd.f32 %v942_v57, %v557_v42 }
 0x10c   : > { %v4954_v62 = vadd.f32 %v1247_v39, %v1019_v60 }
 0x10f   : > { %v3990_v63 = vpop.f32.mrf.mxu1  ;;  %v4008_v0 = vpop.f32.mrf.mxu0 }
 0x110   : > { %v1024_v1 = vadd.f32 %v3990_v63, %v3972_v5 }
 0x111   : > { %v955_v6 = vpop.f32.mrf.mxu1  ;;  %v1260_v7 = vpop.f32.mrf.mxu0 }
 0x112   : > { %v4956_v10 = vadd.f32 %v4008_v0, %v1024_v1  ;;  %v1022_v11 = vadd.f32 %v955_v6, %v570_v43 }
 0x113   : > { %v3991_v46 = vpop.f32.mrf.mxu1  ;;  %v4009_v13 = vpop.f32.mrf.mxu0 }
 0x114   : > { %v4958_v3 = vadd.f32 %v1260_v7, %v1022_v11  ;;  %v1025_v14 = vadd.f32 %v3991_v46, %v3973_v50 }
 0x115   : > { %v958_v16 = vpop.f32.mrf.mxu1  ;;  %v1263_v47 = vpop.f32.mrf.mxu0 }
 0x116   : > { %v4960_v17 = vadd.f32 %v4009_v13, %v1025_v14  ;;  %v1023_v18 = vadd.f32 %v958_v16, %v573_v51 }
 0x118   : > { %v4962_v20 = vadd.f32 %v1263_v47, %v1023_v18 }
 0x11b   : > { %v3994_v40 = vpop.f32.mrf.mxu1  ;;  %v4012_v48 = vpop.f32.mrf.mxu0 }
 0x11c   : > { %v1028_v61 = vadd.f32 %v3994_v40, %v3976_v35 }
 0x11d   : > { %v971_v21 = vpop.f32.mrf.mxu1  ;;  %v1276_v22 = vpop.f32.mrf.mxu0 }
 0x11e   : > { %v4964_v23 = vadd.f32 %v4012_v48, %v1028_v61  ;;  %v1026_v24 = vadd.f32 %v971_v21, %v586_v38 }
 0x11f   : > { %v3995_v25 = vpop.f32.mrf.mxu1  ;;  %v4013_v26 = vpop.f32.mrf.mxu0 }
 0x120   : > { %v4966_v28 = vadd.f32 %v1276_v22, %v1026_v24  ;;  %v1029_v29 = vadd.f32 %v3995_v25, %v3977_v41 }
 0x121   : > { %v974_v30 = vpop.f32.mrf.mxu1  ;;  %v1279_v36 = vpop.f32.mrf.mxu0 }
 0x122   : > { %v4968_v31 = vadd.f32 %v4013_v26, %v1029_v29  ;;  %v1027_v33 = vadd.f32 %v974_v30, %v589_v58 }
 0x124   : > { %v4970_v37 = vadd.f32 %v1279_v36, %v1027_v33 }
 0x127   : > { %v3998_v4 = vpop.f32.mrf.mxu1  ;;  %v4016_v12 = vpop.f32.mrf.mxu0 }
 0x128   : > { %v1032_v35 = vadd.f32 %v3998_v4, %v3980_v19 }
 0x129   : > { %v987_v15 = vpop.f32.mrf.mxu1  ;;  %v1292_v42 = vpop.f32.mrf.mxu0 }
 0x12a   : > { %v4972_v5 = vadd.f32 %v4016_v12, %v1032_v35  ;;  %v1030_v38 = vadd.f32 %v987_v15, %v602_v44 }
 0x12b   : > { %v3999_v43 = vpop.f32.mrf.mxu1  ;;  %v4017_v50 = vpop.f32.mrf.mxu0 }
 0x12c   : > { %v4974_v51 = vadd.f32 %v1292_v42, %v1030_v38  ;;  %v1033_v41 = vadd.f32 %v3999_v43, %v3981_v2 }
 0x12d   : > { %v990_v52 = vpop.f32.mrf.mxu1  ;;  %v1295_v32 = vpop.f32.mrf.mxu0 }
 0x12e   : > { %v4976_v53 = vadd.f32 %v4017_v50, %v1033_v41  ;;  %v1031_v58 = vadd.f32 %v990_v52, %v605_v49 }
 0x12f   : > { %v4022_v54 = vpop.f32.mrf.mxu1 }
 0x130   : > { %v4978_v55 = vadd.f32 %v1295_v32, %v1031_v58 }
 0x131   : > { %v1475_v34 = vpop.f32.mrf.mxu1 }
 0x132   : > { %v4040_v19 = vpop.f32.mrf.mxu0 }
 0x133   : > { %v4023_v56 = vpop.f32.mrf.mxu1 }
 0x134   : > { %v1889_v8 = vpop.f32.mrf.mxu0 }
 0x135   : > { %v1478_v27 = vpop.f32.mrf.mxu1 }
 0x136   : > { %v4980_v57 = vpop.f32.mrf.mxu0 }
 0x137   : > { %v4026_v44 = vpop.f32.mrf.mxu1 }
 0x138   : > { %v4982_v60 = vpop.f32.mrf.mxu0 }
 0x139   : > { %v1491_v39 = vpop.f32.mrf.mxu1 }
 0x13a   : > { %v4984_v2 = vpop.f32.mrf.mxu0 }
 0x13b   : > { %v4027_v63 = vpop.f32.mrf.mxu1 }
 0x13c   : > { %v4986_v0 = vpop.f32.mrf.mxu0 }
 0x13d   : > { %v1494_v49 = vpop.f32.mrf.mxu1 }
 0x13e   : > { %v4988_v1 = vpop.f32.mrf.mxu0 }
 0x13f   : > { %v4030_v6 = vpop.f32.mrf.mxu1 }
 0x140   : > { %v4990_v7 = vpop.f32.mrf.mxu0 }
 0x141   : > { %v1507_v11 = vpop.f32.mrf.mxu1 }
 0x143   : > { %v4031_v46 = vpop.f32.mrf.mxu1 }
 0x144   : > { %v4992_v13 = vpop.f32.mrf.mxu0 }
 0x145   : > { %v4994_v14 = vpop.f32.mrf.mxu1 }
 0x146   : > { %v4996_v16 = vpop.f32.mrf.mxu0 }
 0x147   : > { %v4998_v18 = vpop.f32.mrf.mxu1 }
 0x148   : > { %v5000_v47 = vpop.f32.mrf.mxu0 }
 0x149   : > { %v5002_v40 = vpop.f32.mrf.mxu1 }
 0x14a   : > { %v5004_v48 = vpop.f32.mrf.mxu0 }
 0x14b   : > { %v5006_v61 = vpop.f32.mrf.mxu1 }
 0x14c   : > { %v5008_v21 = vpop.f32.mrf.mxu0 }
 0x14d   : > { %5268 = vst [vmem:[#allocation7_spill] sm:$0xff] %v5008_v21  ;;  %v5010_v22 = vpop.f32.mrf.mxu1 }
 0x14e   : > { %v5012_v24 = vpop.f32.mrf.mxu0 }
 0x14f   : > { %5269 = vst [vmem:[#allocation8_spill] sm:$0xff] %v5012_v24  ;;  %v4058_v25 = vpop.f32.mrf.mxu1 }
 0x150   : > { %v5014_v26 = vpop.f32.mrf.mxu0 }
 0x151   : > { %5270 = vst [vmem:[#allocation9_spill] sm:$0xff] %v5014_v26  ;;  %v2191_v29 = vpop.f32.mrf.mxu1 }
 0x152   : > { %v5016_v30 = vpop.f32.mrf.mxu0 }
 0x153   : > { %5271 = vst [vmem:[#allocation10_spill] sm:$0xff] %v5016_v30  ;;  %v4059_v33 = vpop.f32.mrf.mxu1 }
 0x154   : > { %v4076_v36 = vpop.f32.mrf.mxu0 }
 0x155   : > { %v2194_v4 = vpop.f32.mrf.mxu1 }
 0x156   : > { %v2422_v12 = vpop.f32.mrf.mxu0 }
 0x157   : > { %v5018_v35 = vpop.f32.mrf.mxu1 }
 0x158   : > { %v4077_v15 = vpop.f32.mrf.mxu0 }
 0x159   : > { %v2207_v42 = vpop.f32.mrf.mxu1 }
 0x15a   : > { %v5020_v38 = vpop.f32.mrf.mxu0 }
 0x15b   : > { %5272 = vst [vmem:[#allocation11_spill] sm:$0xff] %v5020_v38  ;;  %v5022_v43 = vpop.f32.mrf.mxu1  ;;  %v1556_v38 = vadd.f32 %v4022_v54, %v4948_v45 }
 0x15c   : > { %5273 = vst [vmem:[#allocation12_spill] sm:$0xff] %v5022_v43  ;;  %v5024_v50 = vpop.f32.mrf.mxu0 }
 0x15d   : > { %5274 = vst [vmem:[#allocation13_spill] sm:$0xff] %v5024_v50  ;;  %v5026_v41 = vpop.f32.mrf.mxu1 }
 0x15e   : > { %5275 = vst [vmem:[#allocation14_spill] sm:$0xff] %v5026_v41  ;;  %v5028_v52 = vpop.f32.mrf.mxu0 }
 0x15f   : > { %5276 = vst [vmem:[#allocation15_spill] sm:$0xff] %v5028_v52  ;;  %v5030_v58 = vpop.f32.mrf.mxu1  ;;  %v1554_v52 = vadd.f32 %v1475_v34, %v4950_v9  ;;  %v1561_v9 = vadd.f32 %v4027_v63, %v4960_v17  ;;  %v1562_v17 = vadd.f32 %v1507_v11, %v4966_v28  ;;  %v1568_v28 = vadd.f32 %v4998_v18, %v4972_v5 }
 0x160   : > { %5277 = vst [vmem:[#allocation16_spill] sm:$0xff] %v5030_v58  ;;  %v5032_v32 = vpop.f32.mrf.mxu0 }
 0x161   : > { %5278 = vst [vmem:[#allocation17_spill] sm:$0xff] %v5032_v32  ;;  %v5034_v30 = vpop.f32.mrf.mxu1  ;;  %v1970_v32 = vadd.f32 %v4040_v19, %v1556_v38  ;;  %v1968_v54 = vadd.f32 %v1889_v8, %v1554_v52  ;;  %v1559_v19 = vadd.f32 %v1494_v49, %v4962_v20 }
 0x162   : > { %5279 = vst [vmem:[#allocation18_spill] sm:$0xff] %v5034_v30  ;;  %v5036_v26 = vpop.f32.mrf.mxu0  ;;  %v1557_v30 = vadd.f32 %v4023_v56, %v4952_v59  ;;  %v1564_v59 = vadd.f32 %v4030_v6, %v4964_v23  ;;  %v1975_v23 = vadd.f32 %v4988_v1, %v1561_v9  ;;  %v5291_v52 = vld [vmem:[#allocation11_spill] sm:$0xff] }
 0x163   : > { %5280 = vst [vmem:[#allocation19_spill] sm:$0xff] %v5036_v26  ;;  %v5038_v24 = vpop.f32.mrf.mxu1  ;;  %v2272_v34 = vadd.f32 %v4058_v25, %v1970_v32  ;;  %v1973_v6 = vadd.f32 %v4990_v7, %v1559_v19  ;;  %v1976_v7 = vadd.f32 %v4996_v16, %v1562_v17 }
 0x164   : > { %5281 = vst [vmem:[#allocation20_spill] sm:$0xff] %v5038_v24  ;;  %v5040_v21 = vpop.f32.mrf.mxu0  ;;  %v1555_v24 = vadd.f32 %v1478_v27, %v4954_v62  ;;  %v1971_v62 = vadd.f32 %v4980_v57, %v1557_v30  ;;  %v2270_v27 = vadd.f32 %v2191_v29, %v1968_v54  ;;  %v1978_v25 = vadd.f32 %v4992_v13, %v1564_v59  ;;  %v5286_v30 = vld [vmem:[#allocation12_spill] sm:$0xff] }
 0x165   : > { %5282 = vst [vmem:[#allocation21_spill] sm:$0xff] %v5040_v21  ;;  %v5043_v43 = vpop.f32.mrf.mxu1  ;;  %v1560_v21 = vadd.f32 %v4026_v44, %v4956_v10  ;;  %v1565_v44 = vadd.f32 %v4031_v46, %v4968_v31  ;;  %v2503_v63 = vadd.f32 %v4076_v36, %v2272_v34  ;;  %v2277_v16 = vadd.f32 %v5286_v30, %v1975_v23  ;;  %v5117_v59 = vld [vmem:[%s5260_s4] ss:$0 sm:$0xff] }
 0x166   : > { %v5045_v50 = vpop.f32.mrf.mxu0  ;;  %v1969_v8 = vadd.f32 %v4982_v60, %v1555_v24  ;;  %v2273_v49 = vadd.f32 %v4059_v33, %v1971_v62  ;;  %v1563_v60 = vadd.f32 %v4994_v14, %v4970_v37  ;;  %v2501_v1 = vadd.f32 %v2422_v12, %v2270_v27  ;;  %v5287_v33 = vld [vmem:[#allocation14_spill] sm:$0xff]  ;;  %v5289_v12 = vld [vmem:[#allocation9_spill] sm:$0xff] }
 0x167   : > { %5283 = vst [vmem:[#allocation22_spill] sm:$0xff] %v5045_v50  ;;  %v5048_v41 = vpop.f32.mrf.mxu1  ;;  %v1558_v50 = vadd.f32 %v1491_v39, %v4958_v3  ;;  %v1974_v3 = vadd.f32 %v4984_v2, %v1560_v21  ;;  %v1566_v2 = vadd.f32 %v5002_v40, %v4974_v51  ;;  %v1979_v13 = vadd.f32 %v5000_v47, %v1565_v44  ;;  %v5292_v54 = vld [vmem:[#allocation16_spill] sm:$0xff]  ;;  %v5294_v27 = vld [vmem:[#allocation13_spill] sm:$0xff] }
 0x168   : > { %5284 = vst [vmem:[#allocation23_spill] sm:$0xff] %v5048_v41  ;;  %v5050_v58 = vpop.f32.mrf.mxu0  ;;  %v1567_v37 = vadd.f32 %v5010_v22, %v4978_v55  ;;  %v2271_v14 = vadd.f32 %v2194_v4, %v1969_v8  ;;  %v2504_v18 = vadd.f32 %v4077_v15, %v2273_v49  ;;  %v2275_v47 = vadd.f32 %v5287_v33, %v1973_v6  ;;  %v5104_v55 = vld [vmem:[%s5259_s3] ss:$0 sm:$0xff] }
 0x169   : > { %v5053_v26 = vpop.f32.mrf.mxu1  ;;  %v1972_v20 = vadd.f32 %v4986_v0, %v1558_v50  ;;  %v1569_v0 = vadd.f32 %v5006_v61, %v4976_v53  ;;  %v2276_v21 = vadd.f32 %v5018_v35, %v1974_v3  ;;  %v1977_v53 = vadd.f32 %v5004_v48, %v1563_v60  ;;  %v5285_v61 = vld [vmem:[#allocation7_spill] sm:$0xff]  ;;  %v5288_v22 = vld [vmem:[#allocation8_spill] sm:$0xff]  ;;  %v5290_v48 = vld [vmem:[#allocation10_spill] sm:$0xff] }
 0x16a   : > { %v5057_v45 = vpop.f32.mrf.mxu0  ;;  %v1982_v29 = vadd.f32 %v5285_v61, %v1568_v28  ;;  %v1980_v4 = vadd.f32 %v5288_v22, %v1566_v2  ;;  %v5109_v50 = vadd.f32 %v5290_v48, %v1567_v37  ;;  %v2502_v32 = vadd.f32 %v5291_v52, %v2271_v14  ;;  %v5293_v34 = vld [vmem:[#allocation18_spill] sm:$0xff]  ;;  %v5295_v3 = vld [vmem:[#allocation15_spill] sm:$0xff] }
 0x16b   : > { %v5061_v41 = vpop.f32.mrf.mxu1  ;;  %v2274_v51 = vadd.f32 %v2207_v42, %v1972_v20  ;;  %v1983_v35 = vadd.f32 %v5289_v12, %v1569_v0  ;;  %v2280_v9 = vadd.f32 %v5292_v54, %v1978_v25  ;;  %v2278_v19 = vadd.f32 %v5293_v34, %v1976_v7  ;;  %v5298_v25 = vld [vmem:[#allocation20_spill] sm:$0xff] }
 0x16c   : > { %v5065_v56 = vpop.f32.mrf.mxu0  ;;  %v2507_v8 = vadd.f32 %v5294_v27, %v2276_v21  ;;  %v2281_v60 = vadd.f32 %v5298_v25, %v1979_v13  ;;  %v2279_v0 = vadd.f32 %v5043_v43, %v1977_v53  ;;  %v5299_v37 = vld [vmem:[#allocation21_spill] sm:$0xff]  ;;  %v2282_v33 = vadd.f32 %v5053_v26, %v1980_v4 }
 0x16d   : > { %v5068_v10 = vpop.f32.mrf.mxu1  ;;  %v2505_v17 = vadd.f32 %v5295_v3, %v2274_v51  ;;  %v2511_v14 = vadd.f32 %v5299_v37, %v2280_v9  ;;  %v5138_v12 = vadd.f32 %v5061_v41, %v1983_v35 }
 0x16e   : > { %v5074_v39 = vpop.f32.mrf.mxu0 }
 0x16f   : > { %v4094_v57 = vpop.f32.mrf.mxu1  ;;  %v5301_v51 = vld [vmem:[#allocation23_spill] sm:$0xff] }
 0x170   : > { %v5084_v31 = vpop.f32.mrf.mxu0  ;;  %v2917_v11 = vadd.f32 %v4094_v57, %v2503_v63  ;;  %v5296_v63 = vld [vmem:[#allocation17_spill] sm:$0xff]  ;;  %v5297_v57 = vld [vmem:[#allocation19_spill] sm:$0xff] }
 0x171   : > { %v2836_v46 = vpop.f32.mrf.mxu1  ;;  %v2508_v49 = vadd.f32 %v5296_v63, %v2277_v16  ;;  %v2506_v6 = vadd.f32 %v5297_v57, %v2275_v47  ;;  %v2512_v16 = vadd.f32 %v5050_v58, %v2281_v60  ;;  %v2283_v60 = vadd.f32 %v5068_v10, %v5109_v50 }
 0x172   : > { %v5094_v5 = vpop.f32.mrf.mxu0  ;;  %v2915_v40 = vadd.f32 %v2836_v46, %v2501_v1 }
 0x173   : > { %v4095_v24 = vpop.f32.mrf.mxu1 }
 0x174   : > { %v4112_v36 = vpop.f32.mrf.mxu0  ;;  %v2918_v42 = vadd.f32 %v4095_v24, %v2504_v18  ;;  %v5300_v18 = vld [vmem:[#allocation22_spill] sm:$0xff] }
 0x175   : > { %v3219_v15 = vadd.f32 %v4112_v36, %v2917_v11  ;;  %v2839_v38 = vpop.f32.mrf.mxu1  ;;  %v2509_v21 = vadd.f32 %v5300_v18, %v2278_v19 }
 0x176   : > { %v3138_v62 = vpop.f32.mrf.mxu0  ;;  %v2916_v2 = vadd.f32 %v2839_v38, %v2502_v32 }
 0x177   : > { %v3274_v44 = vmul.f32 %v5104_v55, %v3219_v15  ;;  %v3217_v20 = vadd.f32 %v3138_v62, %v2915_v40  ;;  %v4098_v23 = vpop.f32.mrf.mxu1  ;;  %v2284_v40 = vadd.f32 %v5301_v51, %v1982_v29  ;;  %v2510_v29 = vadd.f32 %v5057_v45, %v2279_v0 }
 0x178   : > { %v4113_v28 = vpop.f32.mrf.mxu0  ;;  %v2921_v61 = vadd.f32 %v4098_v23, %v2507_v8 }
 0x179   : > { %v3297_v1 = vadd.f32 %v5117_v59, %v3274_v44  ;;  %v3272_v11 = vmul.f32 %v5104_v55, %v3217_v20  ;;  %v3220_v46 = vadd.f32 %v4113_v28, %v2918_v42  ;;  %v2852_v7 = vpop.f32.mrf.mxu1  ;;  %v2515_v48 = vadd.f32 %v5065_v56, %v2284_v40 }
 0x17a   : > { %v3141_v24 = vpop.f32.mrf.mxu0  ;;  %v2919_v53 = vadd.f32 %v2852_v7, %v2505_v17 }
 0x17b   : > { %vm3313_vm10 = vcmp.gt.f32.partialorder %v3297_v1, 0.0  ;;  %v3329_v13 = vmul.f32 0.1, %v3297_v1  ;;  %v3275_v43 = vmul.f32 %v5104_v55, %v3220_v46  ;;  %v4099_v30 = vpop.f32.mrf.mxu1  ;;  %v3295_v47 = vadd.f32 %v5117_v59, %v3272_v11 }
 0x17c   : > { %v3218_v36 = vadd.f32 %v3141_v24, %v2916_v2  ;;  %v4116_v22 = vpop.f32.mrf.mxu0  ;;  %v2922_v42 = vadd.f32 %v4099_v30, %v2508_v49 }
 0x17d   : > { %v3298_v15 = vadd.f32 %v5117_v59, %v3275_v43  ;;  %v2855_v38 = vpop.f32.mrf.mxu1  ;;  %v3345_v52 = vsel %vm3313_vm10, %v3297_v1, %v3329_v13  ;;  %v3223_v58 = vadd.f32 %v4116_v22, %v2921_v61  ;;  %vm3311_vm12 = vcmp.gt.f32.partialorder %v3295_v47, 0.0 }
 0x17e   : > { %v3273_v26 = vmul.f32 %v5104_v55, %v3218_v36  ;;  %v3154_v4 = vpop.f32.mrf.mxu0  ;;  %v2920_v41 = vadd.f32 %v2855_v38, %v2506_v6  ;;  %v3327_v54 = vmul.f32 0.1, %v3295_v47  ;;  %v2516_v38 = vadd.f32 %v5084_v31, %v5138_v12 }
 0x17f   : > { %vm3314_vm11 = vcmp.gt.f32.partialorder %v3298_v15, 0.0  ;;  %v3330_v45 = vmul.f32 0.1, %v3298_v15  ;;  %v3221_v32 = vadd.f32 %v3154_v4, %v2919_v53  ;;  %v4102_v35 = vpop.f32.mrf.mxu1  ;;  %v3278_v56 = vmul.f32 %v5104_v55, %v3223_v58 }
 0x180   : > { %v3296_v9 = vadd.f32 %v5117_v59, %v3273_v26  ;;  %v4117_v34 = vpop.f32.mrf.mxu0  ;;  %v2925_v8 = vadd.f32 %v4102_v35, %v2511_v14  ;;  %v3343_v28 = vsel %vm3311_vm12, %v3295_v47, %v3327_v54  ;;  %v2513_v14 = vadd.f32 %v5074_v39, %v2282_v33 }
 0x181   : > { %v3346_v19 = vsel %vm3314_vm11, %v3298_v15, %v3330_v45  ;;  %v3276_v62 = vmul.f32 %v5104_v55, %v3221_v32  ;;  %v3224_v27 = vadd.f32 %v4117_v34, %v2922_v42  ;;  %v2868_v3 = vpop.f32.mrf.mxu1  ;;  %v3301_v20 = vadd.f32 %v5117_v59, %v3278_v56 }
 0x182   : > { %v3844_v17 = vpack.c.bf16 %v3346_v19, %v3345_v52  ;;  %vm3312_vm13 = vcmp.gt.f32.partialorder %v3296_v9, 0.0  ;;  %v3328_v44 = vmul.f32 0.1, %v3296_v9  ;;  %v3157_v23 = vpop.f32.mrf.mxu0  ;;  %v2923_v6 = vadd.f32 %v2868_v3, %v2509_v21 }
 0x183   : > { %v3299_v63 = vadd.f32 %v5117_v59, %v3276_v62  ;;  %v3279_v49 = vmul.f32 %v5104_v55, %v3224_v27  ;;  %v3222_v57 = vadd.f32 %v3157_v23, %v2920_v41  ;;  %v4103_v25 = vpop.f32.mrf.mxu1  ;;  %v3333_v0 = vmul.f32 0.1, %v3301_v20 }
 0x184   : > { %3876 = vst [vmem:[%s5158_s27 + $0x8] sm:$0xff] %v3844_v17   ;;  %v3344_v2 = vsel %vm3312_vm13, %v3296_v9, %v3328_v44  ;;  %v4120_v1 = vpop.f32.mrf.mxu0  ;;  %vm3317_vm14 = vcmp.gt.f32.partialorder %v3301_v20, 0.0  ;;  %v2926_v7 = vadd.f32 %v4103_v25, %v2512_v16  ;;  %v2514_v45 = vadd.f32 %v5094_v5, %v2283_v60 }
 0x185   : > { %v3839_v11 = vpack.c.bf16 %v3344_v2, %v3343_v28  ;;  %v3302_v46 = vadd.f32 %v5117_v59, %v3279_v49  ;;  %v2871_v37 = vpop.f32.mrf.mxu1  ;;  %vm3315_vm15 = vcmp.gt.f32.partialorder %v3299_v63, 0.0  ;;  %v3277_v10 = vmul.f32 %v5104_v55, %v3222_v57 }
 0x186   : > { %v3227_v50 = vadd.f32 %v4120_v1, %v2925_v8  ;;  %v3170_v18 = vpop.f32.mrf.mxu0  ;;  %v2924_v40 = vadd.f32 %v2871_v37, %v2510_v29  ;;  %v3349_v61 = vsel %vm3317_vm14, %v3301_v20, %v3333_v0  ;;  %v3331_v13 = vmul.f32 0.1, %v3299_v63 }
 0x187   : > { %3840 = vst [vmem:[%s5158_s27] sm:$0xff] %v3839_v11   ;;  %vm3318_vm0 = vcmp.gt.f32.partialorder %v3302_v46, 0.0  ;;  %v3334_v21 = vmul.f32 0.1, %v3302_v46  ;;  %v3225_v51 = vadd.f32 %v3170_v18, %v2923_v6  ;;  %v4106_v24 = vpop.f32.mrf.mxu1  ;;  %v3300_v43 = vadd.f32 %v5117_v59, %v3277_v10 }
 0x188   : > { %v3282_v53 = vmul.f32 %v5104_v55, %v3227_v50  ;;  %v4121_v30 = vpop.f32.mrf.mxu0  ;;  %v2929_v47 = vadd.f32 %v4106_v24, %v2515_v48  ;;  %v3347_v48 = vsel %vm3315_vm15, %v3299_v63, %v3331_v13 }
 0x189   : > { %v3350_v16 = vsel %vm3318_vm0, %v3302_v46, %v3334_v21  ;;  %v3280_v39 = vmul.f32 %v5104_v55, %v3225_v51  ;;  %v3228_v33 = vadd.f32 %v4121_v30, %v2926_v7  ;;  %v2884_v36 = vpop.f32.mrf.mxu1  ;;  %vm3316_vm1 = vcmp.gt.f32.partialorder %v3300_v43, 0.0 }
 0x18a   : > { %v3854_v22 = vpack.c.bf16 %v3350_v16, %v3349_v61  ;;  %v3332_v15 = vmul.f32 0.1, %v3300_v43  ;;  %v3305_v29 = vadd.f32 %v5117_v59, %v3282_v53  ;;  %v3173_v42 = vpop.f32.mrf.mxu0  ;;  %v2927_v58 = vadd.f32 %v2884_v36, %v2513_v14 }
 0x18b   : > { %v3283_v52 = vmul.f32 %v5104_v55, %v3228_v33  ;;  %v3226_v26 = vadd.f32 %v3173_v42, %v2924_v40  ;;  %v4107_v4 = vpop.f32.mrf.mxu1  ;;  %v3303_v41 = vadd.f32 %v5117_v59, %v3280_v39 }
 0x18c   : > { %3878 = vst [vmem:[%s5158_s27 + $0x18] sm:$0xff] %v3854_v22   ;;  %v3348_v32 = vsel %vm3316_vm1, %v3300_v43, %v3332_v15  ;;  %v4124_v35 = vpop.f32.mrf.mxu0  ;;  %v3337_v9 = vmul.f32 0.1, %v3305_v29  ;;  %v2930_v31 = vadd.f32 %v4107_v4, %v2516_v38  ;;  %vm3321_vm2 = vcmp.gt.f32.partialorder %v3305_v29, 0.0 }
 0x18d   : > { %v3849_v54 = vpack.c.bf16 %v3348_v32, %v3347_v48  ;;  %v3306_v56 = vadd.f32 %v5117_v59, %v3283_v52  ;;  %v2887_v12 = vpop.f32.mrf.mxu1  ;;  %v3281_v34 = vmul.f32 %v5104_v55, %v3226_v26  ;;  %v3231_v19 = vadd.f32 %v4124_v35, %v2929_v47 }
 0x18e   : > { %v3186_v62 = vpop.f32.mrf.mxu0  ;;  %v2928_v8 = vadd.f32 %v2887_v12, %v2514_v45  ;;  %vm3319_vm4 = vcmp.gt.f32.partialorder %v3303_v41, 0.0  ;;  %v3335_v3 = vmul.f32 0.1, %v3303_v41  ;;  %v3353_v23 = vsel %vm3321_vm2, %v3305_v29, %v3337_v9 }
 0x18f   : > { %3877 = vst [vmem:[%s5158_s27 + $0x10] sm:$0xff] %v3849_v54   ;;  %vm3322_vm3 = vcmp.gt.f32.partialorder %v3306_v56, 0.0  ;;  %v3338_v5 = vmul.f32 0.1, %v3306_v56  ;;  %v3229_v27 = vadd.f32 %v3186_v62, %v2927_v58  ;;  %v3304_v17 = vadd.f32 %v5117_v59, %v3281_v34 }
 0x190   : > { %v3286_v44 = vmul.f32 %v5104_v55, %v3231_v19  ;;  %v4125_v20 = vpop.f32.mrf.mxu0  ;;  %v3351_v1 = vsel %vm3319_vm4, %v3303_v41, %v3335_v3 }
 0x191   : > { %v3354_v63 = vsel %vm3322_vm3, %v3306_v56, %v3338_v5  ;;  %v3284_v49 = vmul.f32 %v5104_v55, %v3229_v27  ;;  %v3232_v57 = vadd.f32 %v4125_v20, %v2930_v31  ;;  %vm3320_vm5 = vcmp.gt.f32.partialorder %v3304_v17, 0.0 }
 0x192   : > { %v3864_v6 = vpack.c.bf16 %v3354_v63, %v3353_v23  ;;  %v3336_v25 = vmul.f32 0.1, %v3304_v17  ;;  %v3309_v60 = vadd.f32 %v5117_v59, %v3286_v44  ;;  %v3189_v28 = vpop.f32.mrf.mxu0 }
 0x193   : > { %v3287_v2 = vmul.f32 %v5104_v55, %v3232_v57  ;;  %v3230_v0 = vadd.f32 %v3189_v28, %v2928_v8  ;;  %v3307_v46 = vadd.f32 %v5117_v59, %v3284_v49 }
 0x194   : > { %3880 = vst [vmem:[%s5158_s27 + $0x28] sm:$0xff] %v3864_v6   ;;  %v3352_v11 = vsel %vm3320_vm5, %v3304_v17, %v3336_v25  ;;  %v3341_v37 = vmul.f32 0.1, %v3309_v60  ;;  %vm3325_vm6 = vcmp.gt.f32.partialorder %v3309_v60, 0.0 }
 0x195   : > { %v3859_v7 = vpack.c.bf16 %v3352_v11, %v3351_v1  ;;  %v3310_v14 = vadd.f32 %v5117_v59, %v3287_v2  ;;  %v3285_v10 = vmul.f32 %v5104_v55, %v3230_v0  ;;  %v3339_v18 = vmul.f32 0.1, %v3307_v46 }
 0x196   : > { %v3357_v51 = vsel %vm3325_vm6, %v3309_v60, %v3341_v37  ;;  %vm3323_vm8 = vcmp.gt.f32.partialorder %v3307_v46, 0.0 }
 0x197   : > { %3879 = vst [vmem:[%s5158_s27 + $0x20] sm:$0xff] %v3859_v7   ;;  %vm3326_vm7 = vcmp.gt.f32.partialorder %v3310_v14, 0.0  ;;  %v3342_v50 = vmul.f32 0.1, %v3310_v14  ;;  %v3308_v21 = vadd.f32 %v5117_v59, %v3285_v10  ;;  %v3355_v55 = vsel %vm3323_vm8, %v3307_v46, %v3339_v18 }
 0x199   : > { %v3358_v40 = vsel %vm3326_vm7, %v3310_v14, %v3342_v50  ;;  %vm3324_vm9 = vcmp.gt.f32.partialorder %v3308_v21, 0.0  ;;  %v3340_v61 = vmul.f32 0.1, %v3308_v21 }
 0x19a   : > { %v3874_v24 = vpack.c.bf16 %v3358_v40, %v3357_v51 }
 0x19b   : > { %v3356_v13 = vsel %vm3324_vm9, %v3308_v21, %v3340_v61 }
 0x19c   : > { %3882 = vst [vmem:[%s5158_s27 + $0x38] sm:$0xff] %v3874_v24   ;;  %v3869_v59 = vpack.c.bf16 %v3356_v13, %v3355_v55 }
 0x19e   : > { %3881 = vst [vmem:[%s5158_s27 + $0x30] sm:$0xff] %v3869_v59  }
 0x19f   : > { %4252 = shalt.err (!%p4249_p9)
}
 0x1a0   : > { %s4253_s16 = scalar_lea.hbm %s5198_s12, 1024  ;;  %s4257_s8 = scalar_lea.hbm %s5261_s5, 4096 }
 0x1a1   : > { %p4254_p10 = scmp.ne.s32.totalorder %s5198_s12, %s4253_s16  ;;  %p4258_p13 = scmp.lt.s32.totalorder %s5198_s12, %s5261_s5 }
 0x1a2   : > { %p4259_p0 = scmp.lt.s32.totalorder %s4257_s8, %s4253_s16 }
 0x1a3   : > { %p4255_p11 = pnand %p4254_p10, %p4417_p3 }
 0x1a4   : > { %p4260_p1 = por %p4259_p0, %p4258_p13 }
 0x1a5   : > { %p4256_p12 = pneg %p4255_p11 }
 0x1a7   : > { %p4261_p2 = pnand %p4260_p1, %p4256_p12 }
 0x1a9   : > { %4264 = shalt.err (!%p4261_p2)
}
 0x1aa   : > { %s4334_s10 = smov 64   ;;  %s4335_s15 = smov 4  }
 0x1ab   : > { %4142 = dma.vmem_to_hbm [thread:$0]  (%p4417_p3), %s5200_s22, 1024, %s5198_s12, %s5205_s13, %s4334_s10, %s4334_s10, %s4335_s15  }
 0x1ac PF: > { %p4148_p4 = scmp.ge.s32.totalorder %s4331_s25, 2  ;;  %s3472_s14 = sand.u32 1, %s4303_s18  }
 0x1ad   : > { %s3473_s26 = scalar_lea.sflag [#allocation5], %s3472_s14 }
 0x1ae   : > { %p4145_p5 = pnand %p4148_p4, %p4426_p8 }
 0x1b0   : > { %p4146_p6 = pneg %p4145_p5 }
 0x1b2   : > { %4298 = dma.done.wait (%p4146_p6), %s3473_s26, 1024  }
 0x1b3   : > { %4300 = vsyncadd (%p4146_p6), %s3473_s26, 4294966272  ;;  %s18_s25 = sadd.s32 1, %s4331_s25   ;;  %s5302_s18 = smov %s4307_s19 }
 0x1b4   : > { %p15_p7 = scmp.ge.s32.totalorder %s18_s25, 6   ;;  %s5303_s19 = smov %s4311_s20 }
 0x1b5   : > { %s5304_s20 = smov %s4435_s11  ;;  %s5305_s21 = smov %s4323_s23 }
 0x1b6   : > { %s5306_s22 = smov %s4327_s24  ;;  %s5307_s23 = smov %s5310_s28 }
 0x1b7   : > { %s5308_s24 = smov %s5314_s29  ;;  %17 = sbr.rel (!%p15_p7) target bundleno = 5 (0x5), region = 98 }
 0x1bc   :  { %3478 = vsyncpa [#allocation5], 1 }
 0x1bd   :  { %3480 = vsyncpa [#allocation5 + $0x1], 1 }

</bundles_post_ra>
